<compile_context>
chip_gen: v6e
topology: v6e:2x2x1
jax: 0.10.0
libtpu: 0.0.40
codegen_flags: <defaults>
</compile_context>

<pallas_src>
import functools

import jax
import jax.numpy as jnp
from jax import lax
from jax.experimental import pallas as pl
from jax.experimental.pallas import tpu as pltpu

# ---------------- small BERT config (synthetic, deterministic init) ----------
VOCAB = 100
HIDDEN = 32
LAYERS = 2
HEADS = 4
HEAD_DIM = HIDDEN // HEADS
INTERMEDIATE = 64
MAX_POS = 16
TYPE_VOCAB = 2
NUM_LABELS = 2
EPS = 1e-12


# ---------------- fused Pallas kernel (one transformer layer per grid step) --
def _bert_kernel(bsz, seq,
                 h_in_ref, onehot_ref,
                 emb_g_ref, emb_b_ref,
                 wqkv_ref, bqkv_ref, wo_ref, bo_ref, ln1_g_ref, ln1_b_ref,
                 w1_ref, b1_ref, w2_ref, b2_ref, ln2_g_ref, ln2_b_ref,
                 pool_w_ref, pool_b_ref, cls_w_ref, cls_b_ref,
                 loss_ref, logits_ref,
                 h_scr):
    f32 = jnp.float32
    bf16 = jnp.bfloat16
    layer = pl.program_id(0)

    def layernorm(x, g, b):
        mean = jnp.mean(x, axis=-1, keepdims=True)
        cen = x - mean
        var = jnp.mean(cen * cen, axis=-1, keepdims=True)
        return cen * lax.rsqrt(var + EPS) * g + b

    def mm_bias(x_bf, w_bf, b_f32):
        # bf16 MXU operands (pre-cast by the caller), f32 accumulation + bias.
        return jnp.dot(x_bf, w_bf, preferred_element_type=f32) + b_f32

    # ---- first grid step: embedding LayerNorm seeds the carried activation --
    @pl.when(layer == 0)
    def _():
        h_scr[...] = layernorm(h_in_ref[...], emb_g_ref[...], emb_b_ref[...])

    # ---- one transformer layer per grid step (weights streamed per layer) ---
    h = h_scr[...]                     # (B*S, H) f32, carried across layers
    h_bf = h.astype(bf16)              # bf16 shadow, cast once per LN output

    qkv = mm_bias(h_bf, wqkv_ref[...], bqkv_ref[...])    # (B*S, 3H) f32
    qkv_bf = qkv.astype(bf16)                            # one cast for q,k,v

    def head(base, hd):
        lo = base + hd * HEAD_DIM
        return qkv_bf[:, lo:lo + HEAD_DIM].reshape(bsz, seq, HEAD_DIM)

    # multi-head attention; 1/sqrt(head_dim) is pre-folded into wqkv's Q cols.
    ctx_heads = []
    for hd in range(HEADS):
        q_h = head(0, hd)
        k_h = head(HIDDEN, hd)
        v_h = head(2 * HIDDEN, hd)
        s = jnp.einsum("bqd,bkd->bqk", q_h, k_h, preferred_element_type=f32)
        s = s - jnp.max(s, axis=-1, keepdims=True)
        p = jnp.exp(s)
        p = p * pl.reciprocal(jnp.sum(p, axis=-1, keepdims=True), approx=True)
        ctx_h = jnp.einsum("bqk,bkd->bqd", p.astype(bf16), v_h,
                           preferred_element_type=f32)
        ctx_heads.append(ctx_h.reshape(bsz * seq, HEAD_DIM))
    ctx = jnp.concatenate(ctx_heads, axis=-1)            # (B*S, H) f32

    # attention output projection + residual + LN
    attn_out = mm_bias(ctx.astype(bf16), wo_ref[...], bo_ref[...])
    h = layernorm(attn_out + h, ln1_g_ref[...], ln1_b_ref[...])
    h_bf = h.astype(bf16)

    # feed-forward (erf GELU, as in HF BERT) + residual + LN
    ff = mm_bias(h_bf, w1_ref[...], b1_ref[...])
    ff = 0.5 * ff * (1.0 + lax.erf(ff * 0.7071067811865475))
    ff = mm_bias(ff.astype(bf16), w2_ref[...], b2_ref[...])
    h = layernorm(ff + h, ln2_g_ref[...], ln2_b_ref[...])
    h_scr[...] = h

    # ---- last grid step: pooler (CLS) + classifier + CE loss, all f32 -------
    @pl.when(layer == pl.num_programs(0) - 1)
    def _():
        cls = h.reshape(bsz, seq, HIDDEN)[:, 0:1, :].reshape(bsz, HIDDEN)
        pooled = jnp.tanh(
            jnp.dot(cls, pool_w_ref[...], preferred_element_type=f32)
            + pool_b_ref[...])
        logits = (jnp.dot(pooled, cls_w_ref[...], preferred_element_type=f32)
                  + cls_b_ref[...])
        logits_ref[...] = logits

        z = logits - jnp.max(logits, axis=-1, keepdims=True)
        lse = jnp.log(jnp.sum(jnp.exp(z), axis=-1, keepdims=True))
        nll = -jnp.sum(onehot_ref[...] * (z - lse), axis=-1, keepdims=True)
        loss_ref[...] = jnp.sum(nll, keepdims=True) * (1.0 / bsz)


# ---------------- BlockSpec helpers ------------------------------------------
def _const_spec(shape):
    zeros = (0,) * len(shape)
    return pl.BlockSpec(shape, lambda l: zeros)


def _layer_spec(shape):
    # Per-layer parameter stacked on a leading LAYERS axis; stream one layer's
    # block per grid step (leading dim squeezed out of the kernel ref).
    zeros = (0,) * (len(shape) - 1)
    return pl.BlockSpec((None,) + tuple(shape[1:]), lambda l: (l,) + zeros)


# ---------------- parameters (deterministic synthetic init) ------------------
def init_params(key):
    keys = iter(jax.random.split(key, 64))

    def nrm(shape):
        return (0.02 * jax.random.normal(next(keys), shape)).astype(jnp.float32)

    def zeros(shape):
        return jnp.zeros(shape, jnp.float32)

    def ones(shape):
        return jnp.ones(shape, jnp.float32)

    return {
        "word_emb": nrm((VOCAB, HIDDEN)),
        "pos_emb": nrm((MAX_POS, HIDDEN)),
        "type_emb": nrm((TYPE_VOCAB, HIDDEN)),
        "emb_ln_g": ones((1, HIDDEN)), "emb_ln_b": zeros((1, HIDDEN)),
        # per-layer params stacked along a leading LAYERS axis
        "wqkv": nrm((LAYERS, HIDDEN, 3 * HIDDEN)),
        "bqkv": zeros((LAYERS, 1, 3 * HIDDEN)),
        "wo": nrm((LAYERS, HIDDEN, HIDDEN)), "bo": zeros((LAYERS, 1, HIDDEN)),
        "ln1_g": ones((LAYERS, 1, HIDDEN)), "ln1_b": zeros((LAYERS, 1, HIDDEN)),
        "w1": nrm((LAYERS, HIDDEN, INTERMEDIATE)),
        "b1": zeros((LAYERS, 1, INTERMEDIATE)),
        "w2": nrm((LAYERS, INTERMEDIATE, HIDDEN)),
        "b2": zeros((LAYERS, 1, HIDDEN)),
        "ln2_g": ones((LAYERS, 1, HIDDEN)), "ln2_b": zeros((LAYERS, 1, HIDDEN)),
        "pool_w": nrm((HIDDEN, HIDDEN)), "pool_b": zeros((1, HIDDEN)),
        "cls_w": nrm((HIDDEN, NUM_LABELS)), "cls_b": zeros((1, NUM_LABELS)),
    }


# ---------------- forward pass -----------------------------------------------
def bert_forward(params, text, label, training=True):
    B, S = text.shape
    assert S <= MAX_POS, "sequence length exceeds position-embedding table"

    # embeddings: word + position + token-type (all type 0) -- JAX glue
    emb = (
        jnp.take(params["word_emb"], text, axis=0)
        + params["pos_emb"][None, :S, :]
        + jnp.take(params["type_emb"], jnp.zeros_like(text), axis=0)
    )
    h = emb.reshape(B * S, HIDDEN).astype(jnp.float32)
    onehot = jax.nn.one_hot(label, NUM_LABELS, dtype=jnp.float32)

    bf16 = jnp.bfloat16
    # Fold the 1/sqrt(head_dim) attention scale into the Q columns of the
    # fused QKV weight/bias (free host-side preprocessing).
    scale = 1.0 / (HEAD_DIM ** 0.5)
    col_scale = jnp.concatenate(
        [jnp.full((HIDDEN,), scale, jnp.float32),
         jnp.ones((2 * HIDDEN,), jnp.float32)])
    wqkv = (params["wqkv"] * col_scale).astype(bf16)
    bqkv = params["bqkv"] * col_scale   # stays f32

    inputs = (
        h, onehot,
        params["emb_ln_g"], params["emb_ln_b"],
        wqkv, bqkv,
        params["wo"].astype(bf16), params["bo"],
        params["ln1_g"], params["ln1_b"],
        params["w1"].astype(bf16), params["b1"],
        params["w2"].astype(bf16), params["b2"],
        params["ln2_g"], params["ln2_b"],
        # pooler / classifier stay f32: matmuls are tiny, bf16 only costs
        # logits/loss accuracy.
        params["pool_w"], params["pool_b"],
        params["cls_w"], params["cls_b"],
    )

    in_specs = [
        _const_spec(h.shape), _const_spec(onehot.shape),
        _const_spec(params["emb_ln_g"].shape), _const_spec(params["emb_ln_b"].shape),
        _layer_spec(wqkv.shape), _layer_spec(bqkv.shape),
        _layer_spec(params["wo"].shape), _layer_spec(params["bo"].shape),
        _layer_spec(params["ln1_g"].shape), _layer_spec(params["ln1_b"].shape),
        _layer_spec(params["w1"].shape), _layer_spec(params["b1"].shape),
        _layer_spec(params["w2"].shape), _layer_spec(params["b2"].shape),
        _layer_spec(params["ln2_g"].shape), _layer_spec(params["ln2_b"].shape),
        _const_spec(params["pool_w"].shape), _const_spec(params["pool_b"].shape),
        _const_spec(params["cls_w"].shape), _const_spec(params["cls_b"].shape),
    ]

    loss, logits = pl.pallas_call(
        functools.partial(_bert_kernel, B, S),
        out_shape=(
            jax.ShapeDtypeStruct((1, 1), jnp.float32),
            jax.ShapeDtypeStruct((B, NUM_LABELS), jnp.float32),
        ),
        grid=(LAYERS,),
        in_specs=in_specs,
        out_specs=(_const_spec((1, 1)), _const_spec((B, NUM_LABELS))),
        scratch_shapes=[pltpu.VMEM((B * S, HIDDEN), jnp.float32)],
        compiler_params=pltpu.CompilerParams(
            dimension_semantics=("arbitrary",),   # layer carry is sequential
            vmem_limit_bytes=32 * 1024 * 1024),   # explicit, safe on v5e-v7x
    )(*inputs)

    loss = loss[0, 0]
    if training:
        return loss, logits  # matches (loss, prediction) of the torch module
    return loss, logits      # torch eval path still slices [:2]


# ---------------- demo --------------------------------------------------------
if __name__ == "__main__":
    key = jax.random.PRNGKey(0)
    pkey, tkey, lkey = jax.random.split(key, 3)
    params = init_params(pkey)

    B, S = 2, 8
    text = jax.random.randint(tkey, (B, S), 0, VOCAB, dtype=jnp.int32)
    label = jax.random.randint(lkey, (B,), 0, NUM_LABELS, dtype=jnp.int32)

    loss, prediction = bert_forward(params, text, label, training=True)
    jax.block_until_ready((loss, prediction))
    print("KERNEL_OK")
</pallas_src>

<mosaic_0001>
module attributes {stable_mosaic.version = 11 : i64} {
  func.func @_bert_kernel(%arg0: i32, %arg1: memref<16x32xf32, #tpu.memory_space<vmem>>, %arg2: memref<2x2xf32, #tpu.memory_space<vmem>>, %arg3: memref<1x32xf32, #tpu.memory_space<vmem>>, %arg4: memref<1x32xf32, #tpu.memory_space<vmem>>, %arg5: memref<1x32x96xbf16, #tpu.memory_space<vmem>>, %arg6: memref<1x1x96xf32, #tpu.memory_space<vmem>>, %arg7: memref<1x32x32xbf16, #tpu.memory_space<vmem>>, %arg8: memref<1x1x32xf32, #tpu.memory_space<vmem>>, %arg9: memref<1x1x32xf32, #tpu.memory_space<vmem>>, %arg10: memref<1x1x32xf32, #tpu.memory_space<vmem>>, %arg11: memref<1x32x64xbf16, #tpu.memory_space<vmem>>, %arg12: memref<1x1x64xf32, #tpu.memory_space<vmem>>, %arg13: memref<1x64x32xbf16, #tpu.memory_space<vmem>>, %arg14: memref<1x1x32xf32, #tpu.memory_space<vmem>>, %arg15: memref<1x1x32xf32, #tpu.memory_space<vmem>>, %arg16: memref<1x1x32xf32, #tpu.memory_space<vmem>>, %arg17: memref<32x32xf32, #tpu.memory_space<vmem>>, %arg18: memref<1x32xf32, #tpu.memory_space<vmem>>, %arg19: memref<32x2xf32, #tpu.memory_space<vmem>>, %arg20: memref<1x2xf32, #tpu.memory_space<vmem>>, %arg21: memref<1x1xf32, #tpu.memory_space<vmem>>, %arg22: memref<2x2xf32, #tpu.memory_space<vmem>>, %arg23: memref<16x32xf32, #tpu.memory_space<vmem>>) attributes {dimension_semantics = [#tpu.dimension_semantics<arbitrary>], iteration_bounds = array<i64: 2>, scalar_prefetch = 0 : i64, scratch_operands = 1 : i64, tpu.core_type = #tpu.core_type<tc>, window_params = [{pipeline_mode = #tpu.pipeline_mode<synchronous>, transform_indices = @transform_0, window_bounds = array<i64: 16, 32>}, {pipeline_mode = #tpu.pipeline_mode<synchronous>, transform_indices = @transform_1, window_bounds = array<i64: 2, 2>}, {pipeline_mode = #tpu.pipeline_mode<synchronous>, transform_indices = @transform_2, window_bounds = array<i64: 1, 32>}, {pipeline_mode = #tpu.pipeline_mode<synchronous>, transform_indices = @transform_3, window_bounds = array<i64: 1, 32>}, {transform_indices = @transform_4, window_bounds = array<i64: 1, 32, 96>}, {transform_indices = @transform_5, window_bounds = array<i64: 1, 1, 96>}, {transform_indices = @transform_6, window_bounds = array<i64: 1, 32, 32>}, {transform_indices = @transform_7, window_bounds = array<i64: 1, 1, 32>}, {transform_indices = @transform_8, window_bounds = array<i64: 1, 1, 32>}, {transform_indices = @transform_9, window_bounds = array<i64: 1, 1, 32>}, {transform_indices = @transform_10, window_bounds = array<i64: 1, 32, 64>}, {transform_indices = @transform_11, window_bounds = array<i64: 1, 1, 64>}, {transform_indices = @transform_12, window_bounds = array<i64: 1, 64, 32>}, {transform_indices = @transform_13, window_bounds = array<i64: 1, 1, 32>}, {transform_indices = @transform_14, window_bounds = array<i64: 1, 1, 32>}, {transform_indices = @transform_15, window_bounds = array<i64: 1, 1, 32>}, {pipeline_mode = #tpu.pipeline_mode<synchronous>, transform_indices = @transform_16, window_bounds = array<i64: 32, 32>}, {pipeline_mode = #tpu.pipeline_mode<synchronous>, transform_indices = @transform_17, window_bounds = array<i64: 1, 32>}, {pipeline_mode = #tpu.pipeline_mode<synchronous>, transform_indices = @transform_18, window_bounds = array<i64: 32, 2>}, {pipeline_mode = #tpu.pipeline_mode<synchronous>, transform_indices = @transform_19, window_bounds = array<i64: 1, 2>}, {pipeline_mode = #tpu.pipeline_mode<synchronous>, transform_indices = @transform_20, window_bounds = array<i64: 1, 1>}, {pipeline_mode = #tpu.pipeline_mode<synchronous>, transform_indices = @transform_21, window_bounds = array<i64: 2, 2>}]} {
    %c0_i32 = arith.constant 0 : i32
    %0 = arith.cmpi eq, %arg0, %c0_i32 : i32
    %1 = arith.extui %0 : i1 to i32
    %c0_i32_0 = arith.constant 0 : i32
    %2 = arith.cmpi ne, %1, %c0_i32_0 : i32
    scf.if %2 {
      %c0_73 = arith.constant 0 : index
      %c0_74 = arith.constant 0 : index
      %180 = vector.load %arg1[%c0_73, %c0_74] : memref<16x32xf32, #tpu.memory_space<vmem>>, vector<16x32xf32>
      %c0_75 = arith.constant 0 : index
      %c0_76 = arith.constant 0 : index
      %181 = vector.load %arg3[%c0_75, %c0_76] : memref<1x32xf32, #tpu.memory_space<vmem>>, vector<1x32xf32>
      %c0_77 = arith.constant 0 : index
      %c0_78 = arith.constant 0 : index
      %182 = vector.load %arg4[%c0_77, %c0_78] : memref<1x32xf32, #tpu.memory_space<vmem>>, vector<1x32xf32>
      %cst_79 = arith.constant dense<0.000000e+00> : vector<16xf32>
      %183 = vector.multi_reduction <add>, %180, %cst_79 [1] : vector<16x32xf32> to vector<16xf32>
      %184 = vector.shape_cast %183 : vector<16xf32> to vector<16x1xf32>
      %cst_80 = arith.constant 3.200000e+01 : f32
      %185 = vector.broadcast %cst_80 : f32 to vector<16x1xf32>
      %186 = arith.divf %184, %185 : vector<16x1xf32>
      %187 = vector.broadcast %186 : vector<16x1xf32> to vector<16x32xf32>
      %188 = arith.subf %180, %187 : vector<16x32xf32>
      %189 = arith.mulf %188, %188 : vector<16x32xf32>
      %cst_81 = arith.constant dense<0.000000e+00> : vector<16xf32>
      %190 = vector.multi_reduction <add>, %189, %cst_81 [1] : vector<16x32xf32> to vector<16xf32>
      %191 = vector.shape_cast %190 : vector<16xf32> to vector<16x1xf32>
      %cst_82 = arith.constant 3.200000e+01 : f32
      %192 = vector.broadcast %cst_82 : f32 to vector<16x1xf32>
      %193 = arith.divf %191, %192 : vector<16x1xf32>
      %cst_83 = arith.constant 9.99999996E-13 : f32
      %194 = vector.broadcast %cst_83 : f32 to vector<16x1xf32>
      %195 = arith.addf %193, %194 : vector<16x1xf32>
      %196 = math.rsqrt %195 : vector<16x1xf32>
      %197 = vector.broadcast %196 : vector<16x1xf32> to vector<16x32xf32>
      %198 = arith.mulf %188, %197 : vector<16x32xf32>
      %199 = vector.broadcast %181 : vector<1x32xf32> to vector<16x32xf32>
      %200 = arith.mulf %198, %199 : vector<16x32xf32>
      %201 = vector.broadcast %182 : vector<1x32xf32> to vector<16x32xf32>
      %202 = arith.addf %200, %201 : vector<16x32xf32>
      %c0_84 = arith.constant 0 : index
      %c0_85 = arith.constant 0 : index
      %203 = vector.load %arg23[%c0_84, %c0_85] : memref<16x32xf32, #tpu.memory_space<vmem>>, vector<16x32xf32>
      tpu.vector_store %arg23[%c0_84, %c0_85], %202 {strides = array<i32>} : memref<16x32xf32, #tpu.memory_space<vmem>>, vector<16x32xf32>,
    } else {
    }
    %c0 = arith.constant 0 : index
    %c0_1 = arith.constant 0 : index
    %3 = vector.load %arg23[%c0, %c0_1] : memref<16x32xf32, #tpu.memory_space<vmem>>, vector<16x32xf32>
    %4 = arith.truncf %3 : vector<16x32xf32> to vector<16x32xbf16>
    %c0_2 = arith.constant 0 : index
    %c0_3 = arith.constant 0 : index
    %c0_4 = arith.constant 0 : index
    %5 = vector.load %arg5[%c0_2, %c0_3, %c0_4] : memref<1x32x96xbf16, #tpu.memory_space<vmem>>, vector<1x32x96xbf16>
    %6 = vector.shape_cast %5 : vector<1x32x96xbf16> to vector<32x96xbf16>
    %c0_5 = arith.constant 0 : index
    %c0_6 = arith.constant 0 : index
    %c0_7 = arith.constant 0 : index
    %7 = vector.load %arg6[%c0_5, %c0_6, %c0_7] : memref<1x1x96xf32, #tpu.memory_space<vmem>>, vector<1x1x96xf32>
    %8 = vector.shape_cast %7 : vector<1x1x96xf32> to vector<1x96xf32>
    %cst = arith.constant dense<0.000000e+00> : vector<16x96xf32>
    %9 = tpu.matmul %4, %6, %cst {dimension_numbers = #tpu.dot_dimension_numbers<[1], [0], [0], [1], [0, 0, 1, 1], [], []>} : vector<16x32xbf16>, vector<32x96xbf16>, vector<16x96xf32> -> vector<16x96xf32>
    %10 = vector.broadcast %8 : vector<1x96xf32> to vector<16x96xf32>
    %11 = arith.addf %9, %10 : vector<16x96xf32>
    %12 = arith.truncf %11 : vector<16x96xf32> to vector<16x96xbf16>
    %13 = vector.extract_strided_slice %12 {offsets = [0, 0], sizes = [16, 8], strides = [1, 1]} : vector<16x96xbf16> to vector<16x8xbf16>
    %14 = vector.shape_cast %13 : vector<16x8xbf16> to vector<2x8x8xbf16>
    %15 = vector.extract_strided_slice %12 {offsets = [0, 32], sizes = [16, 8], strides = [1, 1]} : vector<16x96xbf16> to vector<16x8xbf16>
    %16 = vector.shape_cast %15 : vector<16x8xbf16> to vector<2x8x8xbf16>
    %17 = vector.extract_strided_slice %12 {offsets = [0, 64], sizes = [16, 8], strides = [1, 1]} : vector<16x96xbf16> to vector<16x8xbf16>
    %18 = vector.shape_cast %17 : vector<16x8xbf16> to vector<2x8x8xbf16>
    "tpu.trace_start"() <{level = 10 : i32, message = "bqd,bkd->bqk"}> : () -> ()
    %cst_8 = arith.constant dense<0.000000e+00> : vector<2x8x8xf32>
    %19 = tpu.matmul %14, %16, %cst_8 {dimension_numbers = #tpu.dot_dimension_numbers<[2], [2], [1], [1], [0, 0, 0, 1, 1, 1], [0], [0]>} : vector<2x8x8xbf16>, vector<2x8x8xbf16>, vector<2x8x8xf32> -> vector<2x8x8xf32>
    "tpu.trace_stop"() : () -> ()
    %cst_9 = arith.constant dense<0xFF800000> : vector<2x8xf32>
    %20 = vector.multi_reduction <maximumf>, %19, %cst_9 [2] : vector<2x8x8xf32> to vector<2x8xf32>
    %21 = vector.shape_cast %20 : vector<2x8xf32> to vector<2x8x1xf32>
    %22 = vector.broadcast %21 : vector<2x8x1xf32> to vector<2x8x8xf32>
    %23 = arith.subf %19, %22 : vector<2x8x8xf32>
    %24 = math.exp %23 : vector<2x8x8xf32>
    %cst_10 = arith.constant dense<0.000000e+00> : vector<2x8xf32>
    %25 = vector.multi_reduction <add>, %24, %cst_10 [2] : vector<2x8x8xf32> to vector<2x8xf32>
    %26 = vector.shape_cast %25 : vector<2x8xf32> to vector<2x8x1xf32>
    %27 = tpu.reciprocal %26 {approx = true} : vector<2x8x1xf32> -> vector<2x8x1xf32>
    %28 = vector.broadcast %27 : vector<2x8x1xf32> to vector<2x8x8xf32>
    %29 = arith.mulf %24, %28 : vector<2x8x8xf32>
    %30 = arith.truncf %29 : vector<2x8x8xf32> to vector<2x8x8xbf16>
    "tpu.trace_start"() <{level = 10 : i32, message = "bqk,bkd->bqd"}> : () -> ()
    %cst_11 = arith.constant dense<0.000000e+00> : vector<2x8x8xf32>
    %31 = tpu.matmul %30, %18, %cst_11 {dimension_numbers = #tpu.dot_dimension_numbers<[2], [1], [1], [2], [0, 0, 0, 1, 1, 2], [0], [0]>} : vector<2x8x8xbf16>, vector<2x8x8xbf16>, vector<2x8x8xf32> -> vector<2x8x8xf32>
    "tpu.trace_stop"() : () -> ()
    %32 = vector.shape_cast %31 : vector<2x8x8xf32> to vector<16x8xf32>
    %33 = vector.extract_strided_slice %12 {offsets = [0, 8], sizes = [16, 8], strides = [1, 1]} : vector<16x96xbf16> to vector<16x8xbf16>
    %34 = vector.shape_cast %33 : vector<16x8xbf16> to vector<2x8x8xbf16>
    %35 = vector.extract_strided_slice %12 {offsets = [0, 40], sizes = [16, 8], strides = [1, 1]} : vector<16x96xbf16> to vector<16x8xbf16>
    %36 = vector.shape_cast %35 : vector<16x8xbf16> to vector<2x8x8xbf16>
    %37 = vector.extract_strided_slice %12 {offsets = [0, 72], sizes = [16, 8], strides = [1, 1]} : vector<16x96xbf16> to vector<16x8xbf16>
    %38 = vector.shape_cast %37 : vector<16x8xbf16> to vector<2x8x8xbf16>
    "tpu.trace_start"() <{level = 10 : i32, message = "bqd,bkd->bqk"}> : () -> ()
    %cst_12 = arith.constant dense<0.000000e+00> : vector<2x8x8xf32>
    %39 = tpu.matmul %34, %36, %cst_12 {dimension_numbers = #tpu.dot_dimension_numbers<[2], [2], [1], [1], [0, 0, 0, 1, 1, 1], [0], [0]>} : vector<2x8x8xbf16>, vector<2x8x8xbf16>, vector<2x8x8xf32> -> vector<2x8x8xf32>
    "tpu.trace_stop"() : () -> ()
    %cst_13 = arith.constant dense<0xFF800000> : vector<2x8xf32>
    %40 = vector.multi_reduction <maximumf>, %39, %cst_13 [2] : vector<2x8x8xf32> to vector<2x8xf32>
    %41 = vector.shape_cast %40 : vector<2x8xf32> to vector<2x8x1xf32>
    %42 = vector.broadcast %41 : vector<2x8x1xf32> to vector<2x8x8xf32>
    %43 = arith.subf %39, %42 : vector<2x8x8xf32>
    %44 = math.exp %43 : vector<2x8x8xf32>
    %cst_14 = arith.constant dense<0.000000e+00> : vector<2x8xf32>
    %45 = vector.multi_reduction <add>, %44, %cst_14 [2] : vector<2x8x8xf32> to vector<2x8xf32>
    %46 = vector.shape_cast %45 : vector<2x8xf32> to vector<2x8x1xf32>
    %47 = tpu.reciprocal %46 {approx = true} : vector<2x8x1xf32> -> vector<2x8x1xf32>
    %48 = vector.broadcast %47 : vector<2x8x1xf32> to vector<2x8x8xf32>
    %49 = arith.mulf %44, %48 : vector<2x8x8xf32>
    %50 = arith.truncf %49 : vector<2x8x8xf32> to vector<2x8x8xbf16>
    "tpu.trace_start"() <{level = 10 : i32, message = "bqk,bkd->bqd"}> : () -> ()
    %cst_15 = arith.constant dense<0.000000e+00> : vector<2x8x8xf32>
    %51 = tpu.matmul %50, %38, %cst_15 {dimension_numbers = #tpu.dot_dimension_numbers<[2], [1], [1], [2], [0, 0, 0, 1, 1, 2], [0], [0]>} : vector<2x8x8xbf16>, vector<2x8x8xbf16>, vector<2x8x8xf32> -> vector<2x8x8xf32>
    "tpu.trace_stop"() : () -> ()
    %52 = vector.shape_cast %51 : vector<2x8x8xf32> to vector<16x8xf32>
    %53 = vector.extract_strided_slice %12 {offsets = [0, 16], sizes = [16, 8], strides = [1, 1]} : vector<16x96xbf16> to vector<16x8xbf16>
    %54 = vector.shape_cast %53 : vector<16x8xbf16> to vector<2x8x8xbf16>
    %55 = vector.extract_strided_slice %12 {offsets = [0, 48], sizes = [16, 8], strides = [1, 1]} : vector<16x96xbf16> to vector<16x8xbf16>
    %56 = vector.shape_cast %55 : vector<16x8xbf16> to vector<2x8x8xbf16>
    %57 = vector.extract_strided_slice %12 {offsets = [0, 80], sizes = [16, 8], strides = [1, 1]} : vector<16x96xbf16> to vector<16x8xbf16>
    %58 = vector.shape_cast %57 : vector<16x8xbf16> to vector<2x8x8xbf16>
    "tpu.trace_start"() <{level = 10 : i32, message = "bqd,bkd->bqk"}> : () -> ()
    %cst_16 = arith.constant dense<0.000000e+00> : vector<2x8x8xf32>
    %59 = tpu.matmul %54, %56, %cst_16 {dimension_numbers = #tpu.dot_dimension_numbers<[2], [2], [1], [1], [0, 0, 0, 1, 1, 1], [0], [0]>} : vector<2x8x8xbf16>, vector<2x8x8xbf16>, vector<2x8x8xf32> -> vector<2x8x8xf32>
    "tpu.trace_stop"() : () -> ()
    %cst_17 = arith.constant dense<0xFF800000> : vector<2x8xf32>
    %60 = vector.multi_reduction <maximumf>, %59, %cst_17 [2] : vector<2x8x8xf32> to vector<2x8xf32>
    %61 = vector.shape_cast %60 : vector<2x8xf32> to vector<2x8x1xf32>
    %62 = vector.broadcast %61 : vector<2x8x1xf32> to vector<2x8x8xf32>
    %63 = arith.subf %59, %62 : vector<2x8x8xf32>
    %64 = math.exp %63 : vector<2x8x8xf32>
    %cst_18 = arith.constant dense<0.000000e+00> : vector<2x8xf32>
    %65 = vector.multi_reduction <add>, %64, %cst_18 [2] : vector<2x8x8xf32> to vector<2x8xf32>
    %66 = vector.shape_cast %65 : vector<2x8xf32> to vector<2x8x1xf32>
    %67 = tpu.reciprocal %66 {approx = true} : vector<2x8x1xf32> -> vector<2x8x1xf32>
    %68 = vector.broadcast %67 : vector<2x8x1xf32> to vector<2x8x8xf32>
    %69 = arith.mulf %64, %68 : vector<2x8x8xf32>
    %70 = arith.truncf %69 : vector<2x8x8xf32> to vector<2x8x8xbf16>
    "tpu.trace_start"() <{level = 10 : i32, message = "bqk,bkd->bqd"}> : () -> ()
    %cst_19 = arith.constant dense<0.000000e+00> : vector<2x8x8xf32>
    %71 = tpu.matmul %70, %58, %cst_19 {dimension_numbers = #tpu.dot_dimension_numbers<[2], [1], [1], [2], [0, 0, 0, 1, 1, 2], [0], [0]>} : vector<2x8x8xbf16>, vector<2x8x8xbf16>, vector<2x8x8xf32> -> vector<2x8x8xf32>
    "tpu.trace_stop"() : () -> ()
    %72 = vector.shape_cast %71 : vector<2x8x8xf32> to vector<16x8xf32>
    %73 = vector.extract_strided_slice %12 {offsets = [0, 24], sizes = [16, 8], strides = [1, 1]} : vector<16x96xbf16> to vector<16x8xbf16>
    %74 = vector.shape_cast %73 : vector<16x8xbf16> to vector<2x8x8xbf16>
    %75 = vector.extract_strided_slice %12 {offsets = [0, 56], sizes = [16, 8], strides = [1, 1]} : vector<16x96xbf16> to vector<16x8xbf16>
    %76 = vector.shape_cast %75 : vector<16x8xbf16> to vector<2x8x8xbf16>
    %77 = vector.extract_strided_slice %12 {offsets = [0, 88], sizes = [16, 8], strides = [1, 1]} : vector<16x96xbf16> to vector<16x8xbf16>
    %78 = vector.shape_cast %77 : vector<16x8xbf16> to vector<2x8x8xbf16>
    "tpu.trace_start"() <{level = 10 : i32, message = "bqd,bkd->bqk"}> : () -> ()
    %cst_20 = arith.constant dense<0.000000e+00> : vector<2x8x8xf32>
    %79 = tpu.matmul %74, %76, %cst_20 {dimension_numbers = #tpu.dot_dimension_numbers<[2], [2], [1], [1], [0, 0, 0, 1, 1, 1], [0], [0]>} : vector<2x8x8xbf16>, vector<2x8x8xbf16>, vector<2x8x8xf32> -> vector<2x8x8xf32>
    "tpu.trace_stop"() : () -> ()
    %cst_21 = arith.constant dense<0xFF800000> : vector<2x8xf32>
    %80 = vector.multi_reduction <maximumf>, %79, %cst_21 [2] : vector<2x8x8xf32> to vector<2x8xf32>
    %81 = vector.shape_cast %80 : vector<2x8xf32> to vector<2x8x1xf32>
    %82 = vector.broadcast %81 : vector<2x8x1xf32> to vector<2x8x8xf32>
    %83 = arith.subf %79, %82 : vector<2x8x8xf32>
    %84 = math.exp %83 : vector<2x8x8xf32>
    %cst_22 = arith.constant dense<0.000000e+00> : vector<2x8xf32>
    %85 = vector.multi_reduction <add>, %84, %cst_22 [2] : vector<2x8x8xf32> to vector<2x8xf32>
    %86 = vector.shape_cast %85 : vector<2x8xf32> to vector<2x8x1xf32>
    %87 = tpu.reciprocal %86 {approx = true} : vector<2x8x1xf32> -> vector<2x8x1xf32>
    %88 = vector.broadcast %87 : vector<2x8x1xf32> to vector<2x8x8xf32>
    %89 = arith.mulf %84, %88 : vector<2x8x8xf32>
    %90 = arith.truncf %89 : vector<2x8x8xf32> to vector<2x8x8xbf16>
    "tpu.trace_start"() <{level = 10 : i32, message = "bqk,bkd->bqd"}> : () -> ()
    %cst_23 = arith.constant dense<0.000000e+00> : vector<2x8x8xf32>
    %91 = tpu.matmul %90, %78, %cst_23 {dimension_numbers = #tpu.dot_dimension_numbers<[2], [1], [1], [2], [0, 0, 0, 1, 1, 2], [0], [0]>} : vector<2x8x8xbf16>, vector<2x8x8xbf16>, vector<2x8x8xf32> -> vector<2x8x8xf32>
    "tpu.trace_stop"() : () -> ()
    %92 = vector.shape_cast %91 : vector<2x8x8xf32> to vector<16x8xf32>
    %93 = tpu.concatenate %32, %52, %72, %92 in 1 : vector<16x8xf32>, vector<16x8xf32>, vector<16x8xf32>, vector<16x8xf32> -> vector<16x32xf32>
    %94 = arith.truncf %93 : vector<16x32xf32> to vector<16x32xbf16>
    %c0_24 = arith.constant 0 : index
    %c0_25 = arith.constant 0 : index
    %c0_26 = arith.constant 0 : index
    %95 = vector.load %arg7[%c0_24, %c0_25, %c0_26] : memref<1x32x32xbf16, #tpu.memory_space<vmem>>, vector<1x32x32xbf16>
    %96 = vector.shape_cast %95 : vector<1x32x32xbf16> to vector<32x32xbf16>
    %c0_27 = arith.constant 0 : index
    %c0_28 = arith.constant 0 : index
    %c0_29 = arith.constant 0 : index
    %97 = vector.load %arg8[%c0_27, %c0_28, %c0_29] : memref<1x1x32xf32, #tpu.memory_space<vmem>>, vector<1x1x32xf32>
    %98 = vector.shape_cast %97 : vector<1x1x32xf32> to vector<1x32xf32>
    %cst_30 = arith.constant dense<0.000000e+00> : vector<16x32xf32>
    %99 = tpu.matmul %94, %96, %cst_30 {dimension_numbers = #tpu.dot_dimension_numbers<[1], [0], [0], [1], [0, 0, 1, 1], [], []>} : vector<16x32xbf16>, vector<32x32xbf16>, vector<16x32xf32> -> vector<16x32xf32>
    %100 = vector.broadcast %98 : vector<1x32xf32> to vector<16x32xf32>
    %101 = arith.addf %99, %100 : vector<16x32xf32>
    %102 = arith.addf %101, %3 : vector<16x32xf32>
    %c0_31 = arith.constant 0 : index
    %c0_32 = arith.constant 0 : index
    %c0_33 = arith.constant 0 : index
    %103 = vector.load %arg9[%c0_31, %c0_32, %c0_33] : memref<1x1x32xf32, #tpu.memory_space<vmem>>, vector<1x1x32xf32>
    %104 = vector.shape_cast %103 : vector<1x1x32xf32> to vector<1x32xf32>
    %c0_34 = arith.constant 0 : index
    %c0_35 = arith.constant 0 : index
    %c0_36 = arith.constant 0 : index
    %105 = vector.load %arg10[%c0_34, %c0_35, %c0_36] : memref<1x1x32xf32, #tpu.memory_space<vmem>>, vector<1x1x32xf32>
    %106 = vector.shape_cast %105 : vector<1x1x32xf32> to vector<1x32xf32>
    %cst_37 = arith.constant dense<0.000000e+00> : vector<16xf32>
    %107 = vector.multi_reduction <add>, %102, %cst_37 [1] : vector<16x32xf32> to vector<16xf32>
    %108 = vector.shape_cast %107 : vector<16xf32> to vector<16x1xf32>
    %cst_38 = arith.constant 3.200000e+01 : f32
    %109 = vector.broadcast %cst_38 : f32 to vector<16x1xf32>
    %110 = arith.divf %108, %109 : vector<16x1xf32>
    %111 = vector.broadcast %110 : vector<16x1xf32> to vector<16x32xf32>
    %112 = arith.subf %102, %111 : vector<16x32xf32>
    %113 = arith.mulf %112, %112 : vector<16x32xf32>
    %cst_39 = arith.constant dense<0.000000e+00> : vector<16xf32>
    %114 = vector.multi_reduction <add>, %113, %cst_39 [1] : vector<16x32xf32> to vector<16xf32>
    %115 = vector.shape_cast %114 : vector<16xf32> to vector<16x1xf32>
    %cst_40 = arith.constant 3.200000e+01 : f32
    %116 = vector.broadcast %cst_40 : f32 to vector<16x1xf32>
    %117 = arith.divf %115, %116 : vector<16x1xf32>
    %cst_41 = arith.constant 9.99999996E-13 : f32
    %118 = vector.broadcast %cst_41 : f32 to vector<16x1xf32>
    %119 = arith.addf %117, %118 : vector<16x1xf32>
    %120 = math.rsqrt %119 : vector<16x1xf32>
    %121 = vector.broadcast %120 : vector<16x1xf32> to vector<16x32xf32>
    %122 = arith.mulf %112, %121 : vector<16x32xf32>
    %123 = vector.broadcast %104 : vector<1x32xf32> to vector<16x32xf32>
    %124 = arith.mulf %122, %123 : vector<16x32xf32>
    %125 = vector.broadcast %106 : vector<1x32xf32> to vector<16x32xf32>
    %126 = arith.addf %124, %125 : vector<16x32xf32>
    %127 = arith.truncf %126 : vector<16x32xf32> to vector<16x32xbf16>
    %c0_42 = arith.constant 0 : index
    %c0_43 = arith.constant 0 : index
    %c0_44 = arith.constant 0 : index
    %128 = vector.load %arg11[%c0_42, %c0_43, %c0_44] : memref<1x32x64xbf16, #tpu.memory_space<vmem>>, vector<1x32x64xbf16>
    %129 = vector.shape_cast %128 : vector<1x32x64xbf16> to vector<32x64xbf16>
    %c0_45 = arith.constant 0 : index
    %c0_46 = arith.constant 0 : index
    %c0_47 = arith.constant 0 : index
    %130 = vector.load %arg12[%c0_45, %c0_46, %c0_47] : memref<1x1x64xf32, #tpu.memory_space<vmem>>, vector<1x1x64xf32>
    %131 = vector.shape_cast %130 : vector<1x1x64xf32> to vector<1x64xf32>
    %cst_48 = arith.constant dense<0.000000e+00> : vector<16x64xf32>
    %132 = tpu.matmul %127, %129, %cst_48 {dimension_numbers = #tpu.dot_dimension_numbers<[1], [0], [0], [1], [0, 0, 1, 1], [], []>} : vector<16x32xbf16>, vector<32x64xbf16>, vector<16x64xf32> -> vector<16x64xf32>
    %133 = vector.broadcast %131 : vector<1x64xf32> to vector<16x64xf32>
    %134 = arith.addf %132, %133 : vector<16x64xf32>
    %cst_49 = arith.constant 5.000000e-01 : f32
    %135 = vector.broadcast %cst_49 : f32 to vector<16x64xf32>
    %136 = arith.mulf %135, %134 : vector<16x64xf32>
    %cst_50 = arith.constant 0.707106769 : f32
    %137 = vector.broadcast %cst_50 : f32 to vector<16x64xf32>
    %138 = arith.mulf %134, %137 : vector<16x64xf32>
    %139 = math.erf %138 : vector<16x64xf32>
    %cst_51 = arith.constant 1.000000e+00 : f32
    %140 = vector.broadcast %cst_51 : f32 to vector<16x64xf32>
    %141 = arith.addf %140, %139 : vector<16x64xf32>
    %142 = arith.mulf %136, %141 : vector<16x64xf32>
    %143 = arith.truncf %142 : vector<16x64xf32> to vector<16x64xbf16>
    %c0_52 = arith.constant 0 : index
    %c0_53 = arith.constant 0 : index
    %c0_54 = arith.constant 0 : index
    %144 = vector.load %arg13[%c0_52, %c0_53, %c0_54] : memref<1x64x32xbf16, #tpu.memory_space<vmem>>, vector<1x64x32xbf16>
    %145 = vector.shape_cast %144 : vector<1x64x32xbf16> to vector<64x32xbf16>
    %c0_55 = arith.constant 0 : index
    %c0_56 = arith.constant 0 : index
    %c0_57 = arith.constant 0 : index
    %146 = vector.load %arg14[%c0_55, %c0_56, %c0_57] : memref<1x1x32xf32, #tpu.memory_space<vmem>>, vector<1x1x32xf32>
    %147 = vector.shape_cast %146 : vector<1x1x32xf32> to vector<1x32xf32>
    %cst_58 = arith.constant dense<0.000000e+00> : vector<16x32xf32>
    %148 = tpu.matmul %143, %145, %cst_58 {dimension_numbers = #tpu.dot_dimension_numbers<[1], [0], [0], [1], [0, 0, 1, 1], [], []>} : vector<16x64xbf16>, vector<64x32xbf16>, vector<16x32xf32> -> vector<16x32xf32>
    %149 = vector.broadcast %147 : vector<1x32xf32> to vector<16x32xf32>
    %150 = arith.addf %148, %149 : vector<16x32xf32>
    %151 = arith.addf %150, %126 : vector<16x32xf32>
    %c0_59 = arith.constant 0 : index
    %c0_60 = arith.constant 0 : index
    %c0_61 = arith.constant 0 : index
    %152 = vector.load %arg15[%c0_59, %c0_60, %c0_61] : memref<1x1x32xf32, #tpu.memory_space<vmem>>, vector<1x1x32xf32>
    %153 = vector.shape_cast %152 : vector<1x1x32xf32> to vector<1x32xf32>
    %c0_62 = arith.constant 0 : index
    %c0_63 = arith.constant 0 : index
    %c0_64 = arith.constant 0 : index
    %154 = vector.load %arg16[%c0_62, %c0_63, %c0_64] : memref<1x1x32xf32, #tpu.memory_space<vmem>>, vector<1x1x32xf32>
    %155 = vector.shape_cast %154 : vector<1x1x32xf32> to vector<1x32xf32>
    %cst_65 = arith.constant dense<0.000000e+00> : vector<16xf32>
    %156 = vector.multi_reduction <add>, %151, %cst_65 [1] : vector<16x32xf32> to vector<16xf32>
    %157 = vector.shape_cast %156 : vector<16xf32> to vector<16x1xf32>
    %cst_66 = arith.constant 3.200000e+01 : f32
    %158 = vector.broadcast %cst_66 : f32 to vector<16x1xf32>
    %159 = arith.divf %157, %158 : vector<16x1xf32>
    %160 = vector.broadcast %159 : vector<16x1xf32> to vector<16x32xf32>
    %161 = arith.subf %151, %160 : vector<16x32xf32>
    %162 = arith.mulf %161, %161 : vector<16x32xf32>
    %cst_67 = arith.constant dense<0.000000e+00> : vector<16xf32>
    %163 = vector.multi_reduction <add>, %162, %cst_67 [1] : vector<16x32xf32> to vector<16xf32>
    %164 = vector.shape_cast %163 : vector<16xf32> to vector<16x1xf32>
    %cst_68 = arith.constant 3.200000e+01 : f32
    %165 = vector.broadcast %cst_68 : f32 to vector<16x1xf32>
    %166 = arith.divf %164, %165 : vector<16x1xf32>
    %cst_69 = arith.constant 9.99999996E-13 : f32
    %167 = vector.broadcast %cst_69 : f32 to vector<16x1xf32>
    %168 = arith.addf %166, %167 : vector<16x1xf32>
    %169 = math.rsqrt %168 : vector<16x1xf32>
    %170 = vector.broadcast %169 : vector<16x1xf32> to vector<16x32xf32>
    %171 = arith.mulf %161, %170 : vector<16x32xf32>
    %172 = vector.broadcast %153 : vector<1x32xf32> to vector<16x32xf32>
    %173 = arith.mulf %171, %172 : vector<16x32xf32>
    %174 = vector.broadcast %155 : vector<1x32xf32> to vector<16x32xf32>
    %175 = arith.addf %173, %174 : vector<16x32xf32>
    %c0_70 = arith.constant 0 : index
    %c0_71 = arith.constant 0 : index
    %176 = vector.load %arg23[%c0_70, %c0_71] : memref<16x32xf32, #tpu.memory_space<vmem>>, vector<16x32xf32>
    tpu.vector_store %arg23[%c0_70, %c0_71], %175 {strides = array<i32>} : memref<16x32xf32, #tpu.memory_space<vmem>>, vector<16x32xf32>,
    %c1_i32 = arith.constant 1 : i32
    %177 = arith.cmpi eq, %arg0, %c1_i32 : i32
    %178 = arith.extui %177 : i1 to i32
    %c0_i32_72 = arith.constant 0 : i32
    %179 = arith.cmpi ne, %178, %c0_i32_72 : i32
    scf.if %179 {
      %180 = vector.shape_cast %175 : vector<16x32xf32> to vector<2x8x32xf32>
      %181 = vector.extract_strided_slice %180 {offsets = [0, 0, 0], sizes = [2, 1, 32], strides = [1, 1, 1]} : vector<2x8x32xf32> to vector<2x1x32xf32>
      %182 = vector.shape_cast %181 : vector<2x1x32xf32> to vector<2x32xf32>
      %c0_73 = arith.constant 0 : index
      %c0_74 = arith.constant 0 : index
      %183 = vector.load %arg17[%c0_73, %c0_74] : memref<32x32xf32, #tpu.memory_space<vmem>>, vector<32x32xf32>
      %cst_75 = arith.constant dense<0.000000e+00> : vector<2x32xf32>
      %184 = tpu.matmul %182, %183, %cst_75 {dimension_numbers = #tpu.dot_dimension_numbers<[1], [0], [0], [1], [0, 0, 1, 1], [], []>} : vector<2x32xf32>, vector<32x32xf32>, vector<2x32xf32> -> vector<2x32xf32>
      %c0_76 = arith.constant 0 : index
      %c0_77 = arith.constant 0 : index
      %185 = vector.load %arg18[%c0_76, %c0_77] : memref<1x32xf32, #tpu.memory_space<vmem>>, vector<1x32xf32>
      %186 = vector.broadcast %185 : vector<1x32xf32> to vector<2x32xf32>
      %187 = arith.addf %184, %186 : vector<2x32xf32>
      %188 = math.tanh %187 : vector<2x32xf32>
      %c0_78 = arith.constant 0 : index
      %c0_79 = arith.constant 0 : index
      %189 = vector.load %arg19[%c0_78, %c0_79] : memref<32x2xf32, #tpu.memory_space<vmem>>, vector<32x2xf32>
      %cst_80 = arith.constant dense<0.000000e+00> : vector<2x2xf32>
      %190 = tpu.matmul %188, %189, %cst_80 {dimension_numbers = #tpu.dot_dimension_numbers<[1], [0], [0], [1], [0, 0, 1, 1], [], []>} : vector<2x32xf32>, vector<32x2xf32>, vector<2x2xf32> -> vector<2x2xf32>
      %c0_81 = arith.constant 0 : index
      %c0_82 = arith.constant 0 : index
      %191 = vector.load %arg20[%c0_81, %c0_82] : memref<1x2xf32, #tpu.memory_space<vmem>>, vector<1x2xf32>
      %192 = vector.broadcast %191 : vector<1x2xf32> to vector<2x2xf32>
      %193 = arith.addf %190, %192 : vector<2x2xf32>
      %c0_83 = arith.constant 0 : index
      %c0_84 = arith.constant 0 : index
      %194 = vector.load %arg22[%c0_83, %c0_84] : memref<2x2xf32, #tpu.memory_space<vmem>>, vector<2x2xf32>
      tpu.vector_store %arg22[%c0_83, %c0_84], %193 {strides = array<i32>} : memref<2x2xf32, #tpu.memory_space<vmem>>, vector<2x2xf32>,
      %cst_85 = arith.constant dense<0xFF800000> : vector<2xf32>
      %195 = vector.multi_reduction <maximumf>, %193, %cst_85 [1] : vector<2x2xf32> to vector<2xf32>
      %196 = vector.shape_cast %195 : vector<2xf32> to vector<2x1xf32>
      %197 = vector.broadcast %196 : vector<2x1xf32> to vector<2x2xf32>
      %198 = arith.subf %193, %197 : vector<2x2xf32>
      %199 = math.exp %198 : vector<2x2xf32>
      %cst_86 = arith.constant dense<0.000000e+00> : vector<2xf32>
      %200 = vector.multi_reduction <add>, %199, %cst_86 [1] : vector<2x2xf32> to vector<2xf32>
      %201 = vector.shape_cast %200 : vector<2xf32> to vector<2x1xf32>
      %202 = math.log %201 : vector<2x1xf32>
      %c0_87 = arith.constant 0 : index
      %c0_88 = arith.constant 0 : index
      %203 = vector.load %arg2[%c0_87, %c0_88] : memref<2x2xf32, #tpu.memory_space<vmem>>, vector<2x2xf32>
      %204 = vector.broadcast %202 : vector<2x1xf32> to vector<2x2xf32>
      %205 = arith.subf %198, %204 : vector<2x2xf32>
      %206 = arith.mulf %203, %205 : vector<2x2xf32>
      %cst_89 = arith.constant dense<0.000000e+00> : vector<2xf32>
      %207 = vector.multi_reduction <add>, %206, %cst_89 [1] : vector<2x2xf32> to vector<2xf32>
      %208 = vector.shape_cast %207 : vector<2xf32> to vector<2x1xf32>
      %cst_90 = arith.constant 0.000000e+00 : f32
      %209 = vector.broadcast %cst_90 : f32 to vector<2x1xf32>
      %210 = arith.subf %209, %208 : vector<2x1xf32>
      %211 = vector.shape_cast %210 : vector<2x1xf32> to vector<1x2x1xf32>
      %cst_91 = arith.constant dense<0.000000e+00> : vector<1xf32>
      %212 = vector.multi_reduction <add>, %211, %cst_91 [1, 2] : vector<1x2x1xf32> to vector<1xf32>
      %213 = vector.shape_cast %212 : vector<1xf32> to vector<1x1x1xf32>
      %214 = vector.extract %213[0, 0, 0] : f32 from vector<1x1x1xf32>
      %215 = vector.broadcast %214 : f32 to vector<1x1xf32>
      %cst_92 = arith.constant 5.000000e-01 : f32
      %216 = vector.broadcast %cst_92 : f32 to vector<1x1xf32>
      %217 = arith.mulf %215, %216 : vector<1x1xf32>
      %c0_93 = arith.constant 0 : index
      %c0_94 = arith.constant 0 : index
      %218 = vector.load %arg21[%c0_93, %c0_94] : memref<1x1xf32, #tpu.memory_space<vmem>>, vector<1x1xf32>
      tpu.vector_store %arg21[%c0_93, %c0_94], %217 {strides = array<i32>} : memref<1x1xf32, #tpu.memory_space<vmem>>, vector<1x1xf32>,
    } else {
    }
    return
  }
  func.func @transform_0(%arg0: i32) -> (i32, i32) {
    %c0_i32 = arith.constant 0 : i32
    %c0_i32_0 = arith.constant 0 : i32
    %c0_i32_1 = arith.constant 0 : i32
    return %c0_i32, %c0_i32_0 : i32, i32
  }
  func.func @transform_1(%arg0: i32) -> (i32, i32) {
    %c0_i32 = arith.constant 0 : i32
    %c0_i32_0 = arith.constant 0 : i32
    %c0_i32_1 = arith.constant 0 : i32
    return %c0_i32, %c0_i32_0 : i32, i32
  }
  func.func @transform_2(%arg0: i32) -> (i32, i32) {
    %c0_i32 = arith.constant 0 : i32
    %c0_i32_0 = arith.constant 0 : i32
    %c0_i32_1 = arith.constant 0 : i32
    return %c0_i32, %c0_i32_0 : i32, i32
  }
  func.func @transform_3(%arg0: i32) -> (i32, i32) {
    %c0_i32 = arith.constant 0 : i32
    %c0_i32_0 = arith.constant 0 : i32
    %c0_i32_1 = arith.constant 0 : i32
    return %c0_i32, %c0_i32_0 : i32, i32
  }
  func.func @transform_4(%arg0: i32) -> (i32, i32, i32) {
    %c0_i32 = arith.constant 0 : i32
    %c0_i32_0 = arith.constant 0 : i32
    %c0_i32_1 = arith.constant 0 : i32
    return %arg0, %c0_i32, %c0_i32_0 : i32, i32, i32
  }
  func.func @transform_5(%arg0: i32) -> (i32, i32, i32) {
    %c0_i32 = arith.constant 0 : i32
    %c0_i32_0 = arith.constant 0 : i32
    %c0_i32_1 = arith.constant 0 : i32
    return %arg0, %c0_i32, %c0_i32_0 : i32, i32, i32
  }
  func.func @transform_6(%arg0: i32) -> (i32, i32, i32) {
    %c0_i32 = arith.constant 0 : i32
    %c0_i32_0 = arith.constant 0 : i32
    %c0_i32_1 = arith.constant 0 : i32
    return %arg0, %c0_i32, %c0_i32_0 : i32, i32, i32
  }
  func.func @transform_7(%arg0: i32) -> (i32, i32, i32) {
    %c0_i32 = arith.constant 0 : i32
    %c0_i32_0 = arith.constant 0 : i32
    %c0_i32_1 = arith.constant 0 : i32
    return %arg0, %c0_i32, %c0_i32_0 : i32, i32, i32
  }
  func.func @transform_8(%arg0: i32) -> (i32, i32, i32) {
    %c0_i32 = arith.constant 0 : i32
    %c0_i32_0 = arith.constant 0 : i32
    %c0_i32_1 = arith.constant 0 : i32
    return %arg0, %c0_i32, %c0_i32_0 : i32, i32, i32
  }
  func.func @transform_9(%arg0: i32) -> (i32, i32, i32) {
    %c0_i32 = arith.constant 0 : i32
    %c0_i32_0 = arith.constant 0 : i32
    %c0_i32_1 = arith.constant 0 : i32
    return %arg0, %c0_i32, %c0_i32_0 : i32, i32, i32
  }
  func.func @transform_10(%arg0: i32) -> (i32, i32, i32) {
    %c0_i32 = arith.constant 0 : i32
    %c0_i32_0 = arith.constant 0 : i32
    %c0_i32_1 = arith.constant 0 : i32
    return %arg0, %c0_i32, %c0_i32_0 : i32, i32, i32
  }
  func.func @transform_11(%arg0: i32) -> (i32, i32, i32) {
    %c0_i32 = arith.constant 0 : i32
    %c0_i32_0 = arith.constant 0 : i32
    %c0_i32_1 = arith.constant 0 : i32
    return %arg0, %c0_i32, %c0_i32_0 : i32, i32, i32
  }
  func.func @transform_12(%arg0: i32) -> (i32, i32, i32) {
    %c0_i32 = arith.constant 0 : i32
    %c0_i32_0 = arith.constant 0 : i32
    %c0_i32_1 = arith.constant 0 : i32
    return %arg0, %c0_i32, %c0_i32_0 : i32, i32, i32
  }
  func.func @transform_13(%arg0: i32) -> (i32, i32, i32) {
    %c0_i32 = arith.constant 0 : i32
    %c0_i32_0 = arith.constant 0 : i32
    %c0_i32_1 = arith.constant 0 : i32
    return %arg0, %c0_i32, %c0_i32_0 : i32, i32, i32
  }
  func.func @transform_14(%arg0: i32) -> (i32, i32, i32) {
    %c0_i32 = arith.constant 0 : i32
    %c0_i32_0 = arith.constant 0 : i32
    %c0_i32_1 = arith.constant 0 : i32
    return %arg0, %c0_i32, %c0_i32_0 : i32, i32, i32
  }
  func.func @transform_15(%arg0: i32) -> (i32, i32, i32) {
    %c0_i32 = arith.constant 0 : i32
    %c0_i32_0 = arith.constant 0 : i32
    %c0_i32_1 = arith.constant 0 : i32
    return %arg0, %c0_i32, %c0_i32_0 : i32, i32, i32
  }
  func.func @transform_16(%arg0: i32) -> (i32, i32) {
    %c0_i32 = arith.constant 0 : i32
    %c0_i32_0 = arith.constant 0 : i32
    %c0_i32_1 = arith.constant 0 : i32
    return %c0_i32, %c0_i32_0 : i32, i32
  }
  func.func @transform_17(%arg0: i32) -> (i32, i32) {
    %c0_i32 = arith.constant 0 : i32
    %c0_i32_0 = arith.constant 0 : i32
    %c0_i32_1 = arith.constant 0 : i32
    return %c0_i32, %c0_i32_0 : i32, i32
  }
  func.func @transform_18(%arg0: i32) -> (i32, i32) {
    %c0_i32 = arith.constant 0 : i32
    %c0_i32_0 = arith.constant 0 : i32
    %c0_i32_1 = arith.constant 0 : i32
    return %c0_i32, %c0_i32_0 : i32, i32
  }
  func.func @transform_19(%arg0: i32) -> (i32, i32) {
    %c0_i32 = arith.constant 0 : i32
    %c0_i32_0 = arith.constant 0 : i32
    %c0_i32_1 = arith.constant 0 : i32
    return %c0_i32, %c0_i32_0 : i32, i32
  }
  func.func @transform_20(%arg0: i32) -> (i32, i32) {
    %c0_i32 = arith.constant 0 : i32
    %c0_i32_0 = arith.constant 0 : i32
    %c0_i32_1 = arith.constant 0 : i32
    return %c0_i32, %c0_i32_0 : i32, i32
  }
  func.func @transform_21(%arg0: i32) -> (i32, i32) {
    %c0_i32 = arith.constant 0 : i32
    %c0_i32_0 = arith.constant 0 : i32
    %c0_i32_1 = arith.constant 0 : i32
    return %c0_i32, %c0_i32_0 : i32, i32
  }
}

</mosaic_0001>

<bundles_post_ra>
// kernel: tpu_custom_call.1
= control target key start
LH: loop header
LB: loop body
LE: loop exit
PB: predicated region body
PF: predicated region fallthrough
CT: control target
= control target key end

     0   :  { %s3798_s0 = inlined_call_operand.hbm [shape: f32[16,32], index: 0, kind: input, shape index: {}]   ;;  %s3799_s1 = inlined_call_operand.vmem [shape: f32[2,2], index: 1, kind: input, shape index: {}]   ;;  %s3800_s2 = inlined_call_operand.hbm [shape: f32[1,32], index: 2, kind: input, shape index: {}]   ;;  %s3801_s3 = inlined_call_operand.hbm [shape: f32[1,32], index: 3, kind: input, shape index: {}]   ;;  %s3802_s4 = inlined_call_operand.vmem [shape: bf16[2,32,96], index: 4, kind: input, shape index: {}]   ;;  %s3803_s5 = inlined_call_operand.vmem [shape: f32[2,1,96], index: 5, kind: input, shape index: {}]   ;;  %s3804_s6 = inlined_call_operand.vmem [shape: bf16[2,32,32], index: 6, kind: input, shape index: {}]   ;;  %s3805_s7 = inlined_call_operand.vmem [shape: f32[2,1,32], index: 7, kind: input, shape index: {}]   ;;  %s3806_s8 = inlined_call_operand.vmem [shape: f32[2,1,32], index: 8, kind: input, shape index: {}]   ;;  %s3807_s9 = inlined_call_operand.vmem [shape: f32[2,1,32], index: 9, kind: input, shape index: {}]   ;;  %s3808_s10 = inlined_call_operand.vmem [shape: bf16[2,32,64], index: 10, kind: input, shape index: {}]   ;;  %s3809_s11 = inlined_call_operand.vmem [shape: f32[2,1,64], index: 11, kind: input, shape index: {}]   ;;  %s3810_s12 = inlined_call_operand.vmem [shape: bf16[2,64,32], index: 12, kind: input, shape index: {}]   ;;  %s3811_s13 = inlined_call_operand.vmem [shape: f32[2,1,32], index: 13, kind: input, shape index: {}]   ;;  %s3812_s14 = inlined_call_operand.vmem [shape: f32[2,1,32], index: 14, kind: input, shape index: {}]   ;;  %s3813_s15 = inlined_call_operand.vmem [shape: f32[2,1,32], index: 15, kind: input, shape index: {}]   ;;  %s3814_s16 = inlined_call_operand.vmem [shape: f32[32,32], index: 16, kind: input, shape index: {}]   ;;  %s3815_s17 = inlined_call_operand.vmem [shape: f32[1,32], index: 17, kind: input, shape index: {}]   ;;  %s3816_s18 = inlined_call_operand.vmem [shape: f32[32,2], index: 18, kind: input, shape index: {}]   ;;  %s3817_s19 = inlined_call_operand.vmem [shape: f32[1,2], index: 19, kind: input, shape index: {}]   ;;  %s3818_s20 = inlined_call_operand.hbm [shape: f32[1,1], index: 20, kind: output, shape index: {0}]   ;;  %s3819_s21 = inlined_call_operand.hbm [shape: f32[2,2], index: 21, kind: output, shape index: {1}]  }
   0x1   :  { %3824 = sst [smem:[#allocation17_spill]] %s3798_s0 }
   0x2   :  { %3825 = sst [smem:[#allocation18_spill]] %s3799_s1 }
   0x3   :  { %3826 = sst [smem:[#allocation19_spill]] %s3800_s2 }
   0x4   :  { %3827 = sst [smem:[#allocation20_spill]] %s3801_s3 }
   0x5   :  { %3828 = sst [smem:[#allocation21_spill]] %s3802_s4 }
   0x6   :  { %3829 = sst [smem:[#allocation22_spill]] %s3803_s5 }
   0x7   :  { %3830 = sst [smem:[#allocation23_spill]] %s3804_s6 }
   0x8   :  { %3831 = sst [smem:[#allocation24_spill]] %s3815_s17 }
   0x9   :  { %3832 = sst [smem:[#allocation25_spill]] %s3816_s18 }
   0xa   :  { %3833 = sst [smem:[#allocation26_spill]] %s3817_s19 }
   0xb   :  { %3834 = sst [smem:[#allocation27_spill]] %s3818_s20 }
   0xc   :  { %3835 = sst [smem:[#allocation28_spill]] %s3819_s21 }
   0xd   :  { %27 = vsyncpa [#allocation4], 0 }
   0xe   :  { %28 = vsyncpa [#allocation7], 0 }
   0xf   :  { %29 = vsyncpa [#allocation5], 0 }
  0x10   :  { %30 = vsyncpa [#allocation11], 0  ;;  %s3368_s2 = smov 0  }
  0x11 LB: > { %3836 = sst [smem:[#allocation16_spill]] %s3231_s2  ;;  %s3233_s25 = smov [#allocation6]   ;;  %s3231_s2 = sphi %s3368_s2, %s36_s2  }
  0x12   : > { %s592_s26 = sshll.u32 %s3233_s25, 4  ;;  %s3374_s27 = sadd.s32 4294967295, %s3231_s2   ;;  %s593_s26 = int_to_ptr.vmem [resolvable:$true] %s592_s26 }
  0x13   : > { %p2642_p0 = scmp.ge.s32.totalorder %s3231_s2, 1  ;;  %p563_p1 = scmp.lt.s32.totalorder %s3231_s2, 3 }
  0x14   : > { %p3820_p3 = scmp.eq.s32.totalorder %s3374_s27, 0  ;;  %s3234_s28 = smov [#allocation3]  }
  0x15   : > { %p3380_p4 = pnand %p2642_p0, %p563_p1  ;;  %s575_s29 = sshll.u32 %s3234_s28, 4  ;;  %s576_s29 = int_to_ptr.vmem [resolvable:$true] %s575_s29 }
  0x16   : > { %s3235_s4 = smov [#allocation8]   ;;  %s3094_s5 = scalar_lea.vmem %s593_s26, 16 }
  0x17   : > { %s3837_s3 = scalar_select %p3380_p4, 1, 0 }
  0x18   : > { %p2951_p5 = pneg %p3380_p4  ;;  %s603_s30 = sshll.u32 %s3235_s4, 4  ;;  %s3392_s30 = int_to_ptr.vmem [resolvable:$true] %s603_s30 }
  0x19   : > { %p3095_p8 = scmp.ne.s32.totalorder %s593_s26, %s3094_s5  ;;  %s3101_s22 = scalar_lea.vmem %s593_s26, 32 }
  0x1a   : > { %p3388_p6 = pnand %p3820_p3, %p2951_p5  ;;  %p3102_p11 = scmp.lt.s32.totalorder %s593_s26, %s593_s26 }
  0x1b   : > { %p3103_p12 = scmp.lt.s32.totalorder %s3101_s22, %s3094_s5 }
  0x1c   : > { %p3085_p7 = pneg %p3388_p6 }
  0x1d   : > { %p3104_p13 = por %p3103_p12, %p3102_p11 }
  0x1e   : > { %p3097_p9 = pnand %p3095_p8, %p3085_p7 }
  0x20   : > { %p3098_p10 = pneg %p3097_p9 }
  0x22   : > { %p3105_p0 = pnand %p3104_p13, %p3098_p10 }
  0x24   : > { %3108 = shalt.err (!%p3105_p0)
}
  0x25   : > { %s3839_s24 = sld [smem:[#allocation19_spill]]  ;;  %s3120_s25 = scalar_lea.vmem %s576_s29, 256 }
  0x26   : > { %p3121_p1 = scmp.ne.s32.totalorder %s576_s29, %s3120_s25  ;;  %p3128_p9 = scmp.lt.s32.totalorder %s576_s29, %s576_s29 }
  0x27   : > { %p3129_p2 = scmp.lt.s32.totalorder %s3120_s25, %s3120_s25 }
  0x28   : > { %p3123_p5 = pnand %p3121_p1, %p3085_p7 }
  0x29   : > { %p3130_p3 = por %p3129_p2, %p3128_p9 }
  0x2a   : > { %p3124_p8 = pneg %p3123_p5 }
  0x2b   : > { %2957 = dma.hbm_to_vmem [thread:$0]  (!%p3388_p6), %s3839_s24, 16, %s593_s26, [#allocation7]  }
  0x2c   : > { %p3131_p4 = pnand %p3130_p3, %p3124_p8 }
  0x2e   : > { %3134 = shalt.err (!%p3131_p4)
}
  0x2f   : > { %s3236_s28 = smov 128   ;;  %s3237_s4 = smov 8  }
  0x30   : > { %s3840_s22 = sld [smem:[#allocation17_spill]]  ;;  %s3146_s23 = scalar_lea.vmem %s3392_s30, 16 }
  0x31   : > { %p3147_p10 = scmp.ne.s32.totalorder %s3392_s30, %s3146_s23  ;;  %s3153_s1 = scalar_lea.vmem %s3392_s30, 32 }
  0x32   : > { %p3154_p4 = scmp.lt.s32.totalorder %s3392_s30, %s3392_s30  ;;  %p3155_p11 = scmp.lt.s32.totalorder %s3153_s1, %s3146_s23 }
  0x33   : > { %p3149_p2 = pnand %p3147_p10, %p3085_p7 }
  0x34   : > { %p3156_p12 = por %p3155_p11, %p3154_p4 }
  0x35   : > { %p3150_p3 = pneg %p3149_p2 }
  0x36   : > { %2954 = dma.hbm_to_vmem [thread:$0]  (!%p3388_p6), %s3840_s22, 256, %s576_s29, [#allocation4], %s3236_s28, %s3236_s28, %s3237_s4  }
  0x37   : > { %p3157_p13 = pnand %p3156_p12, %p3150_p3 }
  0x39   : > { %3160 = shalt.err (!%p3157_p13)
}
  0x3a   : > { %s3841_s26 = sld [smem:[#allocation20_spill]]  ;;  %p3842_p0 = scmp.ne.s32.totalorder %s3837_s3, 0 }
  0x3b   : > { %p3843_p7 = scmp.eq.s32.totalorder (!%p3842_p0), %s3374_s27, 0 }
  0x3c   : > { %708 = sbr.rel (%p3842_p0) target bundleno = 5448 (0x1548), region = 100 }
  0x40   : > { %2960 = dma.hbm_to_vmem [thread:$0]  (!%p3388_p6), %s3841_s26, 16, %s3392_s30, [#allocation7]  }
  0x41   : > { %3214 = dma.done.wait (%p3843_p7), [#allocation4], 256   ;;  %p3844_p1 = pmov %p3843_p7 }
  0x43   : > { %3216 = vsyncadd (%p3844_p1), [#allocation4], 4294967040  ;;  %p3845_p5 = pmov %p3844_p1 }
  0x44   : > { %p3846_p8 = pmov %p3844_p1 }
  0x45   : > { %3218 = dma.done.wait (%p3845_p5), [#allocation7], 32  }
  0x46   : > { %3220 = vsyncadd (%p3846_p8), [#allocation7], 4294967264  ;;  %p810_p9 = scmp.lt.s32.totalorder %s3374_s27, 1  ;;  %s3848_s23 = sld [smem:[#allocation21_spill]] }
  0x47   : > { %s3849_s6 = sld [smem:[#allocation23_spill]]  ;;  %p3850_p6 = scmp.ne.s32.totalorder %s3374_s27, 0 }
  0x48   : > { %s3438_s29 = scalar_select %p810_p9, %s3374_s27, 1 }
  0x4a   : > { %s2713_s3 = sshll.u32 %s3438_s29, 4  ;;  %s839_s4 = scalar_lea.vmem %s3809_s11, %s3438_s29 }
  0x4b   : > { %s847_s0 = scalar_lea.vmem %s3811_s13, %s3438_s29  ;;  %s850_s5 = scalar_lea.vmem %s3812_s14, %s3438_s29 }
  0x4c   : > { %s3448_s1 = scalar_lea.vmem %s3848_s23, %s2713_s3  ;;  %s3470_s23 = scalar_lea.vmem %s3808_s10, %s2713_s3 }
  0x4d   : > { %s3453_s26 = scalar_lea.vmem %s3849_s6, %s2713_s3  ;;  %s2716_s6 = sshll.u32 %s3438_s29, 5 }
  0x4e   : > { %s3480_s20 = scalar_lea.vmem %s3810_s12, %s2716_s6  ;;  %s853_s18 = scalar_lea.vmem %s3813_s15, %s3438_s29 }
  0x4f   : > { %858 = sbr.rel (%p3850_p6) target bundleno = 398 (0x18e), region = 116 }
  0x54   : > { %v859_v0 = vld [vmem:[#allocation3] sm:$0xff]  ;;  %vm863_vm0 = vcmask 261120   ;;  %v860_v1 = vld [vmem:[#allocation3 + $0x8] sm:$0xff]  ;;  %v2660_v21 = vld [vmem:[#allocation6] ss:$0 sm:$0xff] }
  0x55   : > { %v864_v2 = vsel %vm863_vm0, %v859_v0, 0.0  ;;  %v867_v3 = vsel %vm863_vm0, %v860_v1, 0.0  ;;  %v2661_v23 = vld [vmem:[#allocation8] ss:$0 sm:$0xff] }
  0x56   : > { %865 = vadd.xlane.f32.xlu0 %v864_v2 }
  0x5a   : > { %868 = vadd.xlane.f32.xlu0 %v867_v3 }
  0xdf   : > { %v866_v4 = vpop.xlane.xlu0 %865 }
  0xe0   : > { %v871_v5 = vmul.f32 0.03125, %v866_v4 }
  0xe2   : > { %v873_v6 = vsub.f32 %v859_v0, %v871_v5 }
  0xe3   : > { %v869_v7 = vpop.xlane.xlu0 %868 }
  0xe4   : > { %v872_v8 = vmul.f32 0.03125, %v869_v7  ;;  %v875_v9 = vmul.f32 %v873_v6, %v873_v6 }
  0xe6   : > { %v874_v10 = vsub.f32 %v860_v1, %v872_v8  ;;  %v877_v11 = vsel %vm863_vm0, %v875_v9, 0.0 }
  0xe7   : > { %878 = vadd.xlane.f32.xlu1 %v877_v11 }
  0xe8   : > { %v876_v12 = vmul.f32 %v874_v10, %v874_v10 }
  0xea   : > { %v880_v13 = vsel %vm863_vm0, %v876_v12, 0.0 }
  0xeb   : > { %881 = vadd.xlane.f32.xlu1 %v880_v13 }
 0x170   : > { %v879_v14 = vpop.xlane.xlu1 %878 }
 0x171   : > { %v883_v15 = vmul.f32 0.03125, %v879_v14 }
 0x173   : > { %v885_v16 = vadd.f32 1e-12, %v883_v15 }
 0x174   : > { %v882_v17 = vpop.xlane.xlu1 %881 }
 0x175   : > { %3004 = vrsqrt.f32 %v885_v16  ;;  %v884_v18 = vmul.f32 0.03125, %v882_v17 }
 0x177   : > { %v886_v19 = vadd.f32 1e-12, %v884_v18 }
 0x179   : > { %3006 = vrsqrt.f32 %v886_v19 }
 0x182   : > { %v3005_v20 = vpop.eup %3004 }
 0x183   : > { %v889_v22 = vmul.f32 %v3005_v20, %v873_v6 }
 0x185   : > { %v897_v24 = vmul.f32 %v2660_v21, %v889_v22 }
 0x186   : > { %v3007_v25 = vpop.eup %3006 }
 0x187   : > { %v905_v26 = vadd.f32 %v2661_v23, %v897_v24  ;;  %v890_v27 = vmul.f32 %v3007_v25, %v874_v10 }
 0x189   : > { %907 = vst.msk [vmem:[#allocation2] sm:$0xff] %vm863_vm0, %v905_v26  ;;  %v898_v28 = vmul.f32 %v2660_v21, %v890_v27 }
 0x18b   : > { %v906_v29 = vadd.f32 %v2661_v23, %v898_v28 }
 0x18d   : > { %908 = vst.msk [vmem:[#allocation2 + $0x8] sm:$0xff] %vm863_vm0, %v906_v29 }
 0x18e PF: > { %v3023_v30 = vld [vmem:[%s3448_s1 + $0x8] sm:$0xff]   ;;  %v3238_v31 = vmov 0.0   ;;  %v3024_v32 = vld [vmem:[%s3448_s1] sm:$0xff]   ;;  %vm3239_vm1 = vmmov 0   ;;  %vm935_vm2 = vcmask 261120   ;;  %s3851_s28 = sld [smem:[#allocation22_spill]] }
 0x18f   : > { %2775 = vmatprep.subr.bf16.mxu0 %v3238_v31  ;;  %2783 = vmatprep.subr.bf16.mxu1 %v3238_v31  ;;  %s3240_s25 = smov 96   ;;  %vm988_vm3 = vcmask 64512   ;;  %s3241_s21 = smov 64   ;;  %vm1112_vm4 = vcmask 1043456   ;;  %vm1890_vm5 = vcmask 130048   ;;  %vm1893_vm6 = vcmask 195584  }
 0x190   : > { %2776 = vmatpush3.bf16.msra.mxu0 %v3023_v30  ;;  %2779 = vmatprep.mubr.msk.bf16.mxu0 %vm3239_vm1, %v3238_v31  ;;  %v3508_v33 = vld [vmem:[#allocation2] sm:$0xff]  ;;  %s3242_s2 = smov 88   ;;  %s3243_s17 = smov 120   ;;  %vm2129_vm7 = vcmask 523264  }
 0x191   : > { %2777 = vmatprep.subr.bf16.mxu0 %v3238_v31  ;;  %2785 = vmatprep.mubr.msk.bf16.mxu1 %vm3239_vm1, %v3238_v31  ;;  %s3244_s19 = smov 56   ;;  %s3245_s30 = smov 80  }
 0x192   : > { %s3246_s3 = smov 112   ;;  %s3247_s22 = smov 48  }
 0x193   : > { %s3248_s6 = smov 72   ;;  %s3249_s1 = smov 104  }
 0x194   : > { %v3510_v34 = vld [vmem:[#allocation2 + $0x8] sm:$0xff]  ;;  %2778 = vmatpush3.bf16.msra.mxu0 %v3024_v32  ;;  %s3852_s24 = scalar_lea.vmem %s3851_s28, %s3438_s29  ;;  %s3250_s28 = smov 40  }
 0x195   : > { %v911_v35 = vpack.c.bf16 %v3510_v34, %v3508_v33  ;;  %2789 = vmatprep.subr.bf16.mxu0 %v3238_v31  ;;  %v2662_v36 = vld [vmem:[%s3852_s24] ss:$0 sm:$0xff]  ;;  %s3251_s24 = smov 8   ;;  %p2702_p10 = scmp.ne.s32.totalorder %s3374_s27, 1 }
 0x197   : > { %2780 = vmatmul.mubr.msk.bf16.vlgmr.msra.gmra.mxu0 %vm935_vm2, %v911_v35 }
 0x198   : > { %2791 = vmatprep.mubr.msk.bf16.mxu0 %vm3239_vm1, %v3238_v31 }
 0x257   : > { %v973_v37 = vpop.f32.mrf.mxu0 }
 0x258   : > { %v974_v38 = vadd.f32 %v2662_v36, %v973_v37 }
 0x259   : > { %v2781_v39 = vpop.f32.mrf.mxu0 }
 0x25a   : > { %v3526_v40 = vpack.c.bf16 %v974_v38, %v974_v38 }
 0x25b   : > { %v976_v41 = vpop.f32.mrf.mxu0 }
 0x25c   : > { %v977_v42 = vadd.f32 %v2662_v36, %v976_v41  ;;  %986 = vrot.lane.b32.xlu0 %v3526_v40, %s3240_s25 }
 0x25d   : > { %v2782_v43 = vpop.f32.mrf.mxu0 }
 0x25e   : > { %v3529_v44 = vpack.c.bf16 %v977_v42, %v977_v42 }
 0x260   : > { %1035 = vrot.lane.b32.xlu0 %v3529_v44, %s3240_s25  ;;  %s3252_s25 = smov 16  }
 0x2ce   : > { %v987_v45 = vpop.permute.xlu0 %986 }
 0x2cf   : > { %v993_v46 = vsel %vm988_vm3, %v987_v45, 0 }
 0x2d0   : > { %2784 = vmatpush3.bf16.xpose.msra.mxu1 %v993_v46 }
 0x2d1   : > { %2795 = vmatprep.subr.bf16.mxu1 %v3238_v31 }
 0x2d2   : > { %v1036_v47 = vpop.permute.xlu0 %1035 }
 0x2d3   : > { %v1041_v48 = vsel %vm988_vm3, %v1036_v47, 0 }
 0x2d4   : > { %2790 = vmatpush3.bf16.xpose.msra.mxu0 %v1041_v48 }
 0x2d5   : > { %2801 = vmatprep.subr.bf16.mxu0 %v3238_v31 }
 0x2d7   : > { %2786 = vmatmul.mubr.msk.bf16.vlgmr.msra.gmra.mxu1 %vm988_vm3, %v3526_v40 }
 0x2d8   : > { %2797 = vmatprep.mubr.msk.bf16.mxu1 %vm3239_vm1, %v3238_v31 }
 0x2db   : > { %2792 = vmatmul.mubr.msk.bf16.vlgmr.msra.gmra.mxu0 %vm988_vm3, %v3529_v44 }
 0x2dc   : > { %2803 = vmatprep.mubr.msk.bf16.mxu0 %vm3239_vm1, %v3238_v31 }
 0x397   : > { %v1029_v49 = vpop.f32.mrf.mxu1 }
 0x398   : > { %v1083_v50 = vsel %vm988_vm3, %v1029_v49, -inf }
 0x399   : > { %1084 = vmax.xlane.f32.xlu1 %v1083_v50  ;;  %v2787_v51 = vpop.f32.mrf.mxu1 }
 0x39b   : > { %v1032_v52 = vpop.f32.mrf.mxu1  ;;  %v1077_v53 = vpop.f32.mrf.mxu0 }
 0x39c   : > { %v1086_v54 = vsel %vm988_vm3, %v1077_v53, -inf }
 0x39d   : > { %v2788_v55 = vpop.f32.mrf.mxu1  ;;  %1087 = vmax.xlane.f32.xlu1 %v1086_v54  ;;  %v2793_v56 = vpop.f32.mrf.mxu0 }
 0x39f   : > { %v1080_v57 = vpop.f32.mrf.mxu0 }
 0x3a1   : > { %v2794_v58 = vpop.f32.mrf.mxu0 }
 0x3ae   : > { %1107 = vrot.lane.b32.xlu1 %v3526_v40, %s3241_s21 }
 0x3b2   : > { %1156 = vrot.lane.b32.xlu1 %v3529_v44, %s3241_s21  ;;  %s3253_s21 = smov 24  }
 0x3b6   : > { %1206 = vrot.lane.b32.xlu1 %v3526_v40, %s3242_s2 }
 0x422   : > { %v1085_v59 = vpop.xlane.xlu1 %1084 }
 0x423   : > { %v1089_v60 = vsub.f32 %v1029_v49, %v1085_v59 }
 0x425   : > { %v1091_v61 = vmul.f32 1.442695, %v1089_v60 }
 0x426   : > { %v1088_v62 = vpop.xlane.xlu1 %1087 }
 0x427   : > { %3033 = vpow2.f32 %v1091_v61  ;;  %v1090_v63 = vsub.f32 %v1077_v53, %v1088_v62 }
 0x429   : > { %v1093_v0 = vmul.f32 1.442695, %v1090_v63 }
 0x42a   : > { %v1108_v1 = vpop.permute.xlu1 %1107 }
 0x42b   : > { %3035 = vpow2.f32 %v1093_v0  ;;  %v1114_v2 = vsel %vm1112_vm4, %v1108_v1, 0 }
 0x42c   : > { %2796 = vmatpush3.bf16.msra.mxu1 %v1114_v2 }
 0x42d   : > { %2807 = vmatprep.subr.bf16.mxu1 %v3238_v31 }
 0x42e   : > { %v1157_v3 = vpop.permute.xlu1 %1156 }
 0x42f   : > { %v1162_v4 = vsel %vm1112_vm4, %v1157_v3, 0 }
 0x430   : > { %2802 = vmatpush3.bf16.msra.mxu0 %v1162_v4 }
 0x431   : > { %2813 = vmatprep.subr.bf16.mxu0 %v3238_v31 }
 0x432   : > { %v1207_v9 = vpop.permute.xlu1 %1206 }
 0x433   : > { %v1212_v16 = vsel %vm988_vm3, %v1207_v9, 0 }
 0x434   : > { %v3034_v5 = vpop.eup %3033 }
 0x435   : > { %v1095_v6 = vsel %vm988_vm3, %v3034_v5, 0.0 }
 0x436   : > { %1096 = vadd.xlane.f32.xlu0 %v1095_v6 }
 0x438   : > { %v3036_v7 = vpop.eup %3035 }
 0x439   : > { %v1098_v8 = vsel %vm988_vm3, %v3036_v7, 0.0 }
 0x43a   : > { %1099 = vadd.xlane.f32.xlu1 %v1098_v8 }
 0x44b   : > { %1256 = vrot.lane.b32.xlu1 %v3529_v44, %s3242_s2 }
 0x44c   : > { %1204 = vrot.lane.b32.xlu0 %v3526_v40, %s3243_s17 }
 0x44f   : > { %1254 = vrot.lane.b32.xlu1 %v3529_v44, %s3243_s17  ;;  %s3853_s17 = scalar_lea.vmem %s3805_s7, %s3438_s29 }
 0x4bf   : > { %v1097_v10 = vpop.xlane.xlu0 %1096 }
 0x4c0   : > { %3037 = vrcp.f32 %v1097_v10 }
 0x4c3   : > { %v1100_v11 = vpop.xlane.xlu1 %1099  ;;  %v1205_v21 = vpop.permute.xlu0 %1204 }
 0x4c4   : > { %3039 = vrcp.f32 %v1100_v11 }
 0x4c7   : > { %v1257_v18 = vpop.permute.xlu1 %1256 }
 0x4c8   : > { %v1262_v20 = vsel %vm988_vm3, %v1257_v18, 0 }
 0x4cb   : > { %v1255_v22 = vpop.permute.xlu1 %1254 }
 0x4cd   : > { %v3038_v12 = vpop.eup %3037 }
 0x4ce   : > { %v1103_v13 = vmul.f32 %v3038_v12, %v3034_v5 }
 0x4d0   : > { %v1105_v14 = vpack.c.bf16 %v1103_v13, %v1103_v13 }
 0x4d1   : > { %v3040_v15 = vpop.eup %3039 }
 0x4d2   : > { %2798 = vmatmul.mubr.msk.bf16.vlgmr.msra.gmra.mxu1 %vm988_vm3, %v1105_v14  ;;  %v1104_v17 = vmul.f32 %v3040_v15, %v3036_v7 }
 0x4d3   : > { %2808 = vmatpush3.bf16.xpose.msra.mxu1 %v1212_v16  ;;  %2809 = vmatprep.mubr.msk.bf16.mxu1 %vm3239_vm1, %v3238_v31 }
 0x4d4   : > { %v1106_v19 = vpack.c.bf16 %v1104_v17, %v1104_v17  ;;  %2819 = vmatprep.subr.bf16.mxu1 %v3238_v31 }
 0x4d6   : > { %2804 = vmatmul.mubr.msk.bf16.vlgmr.msra.gmra.mxu0 %vm988_vm3, %v1106_v19 }
 0x4d7   : > { %2814 = vmatpush3.bf16.xpose.msra.mxu0 %v1262_v20  ;;  %2815 = vmatprep.mubr.msk.bf16.mxu0 %vm3239_vm1, %v3238_v31 }
 0x4d8   : > { %2825 = vmatprep.subr.bf16.mxu0 %v3238_v31 }
 0x4da   : > { %2810 = vmatmul.mubr.msk.bf16.vlgmr.msra.gmra.mxu1 %vm988_vm3, %v1205_v21 }
 0x4db   : > { %2821 = vmatprep.mubr.msk.bf16.mxu1 %vm3239_vm1, %v3238_v31 }
 0x4de   : > { %2816 = vmatmul.mubr.msk.bf16.vlgmr.msra.gmra.mxu0 %vm988_vm3, %v1255_v22 }
 0x4df   : > { %2827 = vmatprep.mubr.msk.bf16.mxu0 %vm3239_vm1, %v3238_v31 }
 0x592   : > { %v3574_v23 = vpop.f32.mrf.mxu1 }
 0x594   : > { %v2799_v24 = vpop.f32.mrf.mxu1 }
 0x596   : > { %v1153_v25 = vpop.f32.mrf.mxu1  ;;  %v3576_v26 = vpop.f32.mrf.mxu0 }
 0x598   : > { %v2800_v27 = vpop.f32.mrf.mxu1  ;;  %v2805_v28 = vpop.f32.mrf.mxu0 }
 0x59a   : > { %v1201_v29 = vpop.f32.mrf.mxu0  ;;  %v1248_v30 = vpop.f32.mrf.mxu1 }
 0x59b   : > { %v1304_v32 = vsel %vm988_vm3, %v1248_v30, -inf }
 0x59c   : > { %1305 = vmax.xlane.f32.xlu1 %v1304_v32  ;;  %v2806_v35 = vpop.f32.mrf.mxu0  ;;  %v2811_v36 = vpop.f32.mrf.mxu1 }
 0x59e   : > { %v1251_v37 = vpop.f32.mrf.mxu1  ;;  %v1298_v38 = vpop.f32.mrf.mxu0 }
 0x59f   : > { %v1307_v39 = vsel %vm988_vm3, %v1298_v38, -inf }
 0x5a0   : > { %v2812_v41 = vpop.f32.mrf.mxu1  ;;  %1308 = vmax.xlane.f32.xlu0 %v1307_v39  ;;  %v2817_v42 = vpop.f32.mrf.mxu0 }
 0x5a2   : > { %v1301_v43 = vpop.f32.mrf.mxu0 }
 0x5a4   : > { %v2818_v45 = vpop.f32.mrf.mxu0 }
 0x5ad   : > { %1328 = vrot.lane.b32.xlu1 %v3526_v40, %s3244_s19 }
 0x5b1   : > { %1426 = vrot.lane.b32.xlu1 %v3526_v40, %s3245_s30 }
 0x5b6   : > { %1376 = vrot.lane.b32.xlu0 %v3529_v44, %s3244_s19 }
 0x5ba   : > { %1424 = vrot.lane.b32.xlu0 %v3526_v40, %s3246_s3 }
 0x625   : > { %v1306_v46 = vpop.xlane.xlu1 %1305 }
 0x626   : > { %v1310_v47 = vsub.f32 %v1248_v30, %v1306_v46 }
 0x628   : > { %v1312_v48 = vmul.f32 1.442695, %v1310_v47 }
 0x629   : > { %v1329_v49 = vpop.permute.xlu1 %1328  ;;  %v1309_v50 = vpop.xlane.xlu0 %1308 }
 0x62a   : > { %3041 = vpow2.f32 %v1312_v48  ;;  %v1334_v51 = vsel %vm1112_vm4, %v1329_v49, 0  ;;  %v1311_v52 = vsub.f32 %v1298_v38, %v1309_v50 }
 0x62b   : > { %2820 = vmatpush3.bf16.msra.mxu1 %v1334_v51 }
 0x62c   : > { %v1314_v53 = vmul.f32 1.442695, %v1311_v52  ;;  %2831 = vmatprep.subr.bf16.mxu1 %v3238_v31 }
 0x62d   : > { %v1377_v54 = vpop.permute.xlu0 %1376  ;;  %v1427_v60 = vpop.permute.xlu1 %1426 }
 0x62e   : > { %3043 = vpow2.f32 %v1314_v53  ;;  %v1382_v55 = vsel %vm1112_vm4, %v1377_v54, 0  ;;  %v1432_v3 = vsel %vm988_vm3, %v1427_v60, 0 }
 0x62f   : > { %2826 = vmatpush3.bf16.msra.mxu0 %v1382_v55 }
 0x630   : > { %2837 = vmatprep.subr.bf16.mxu0 %v3238_v31 }
 0x631   : > { %v1425_v8 = vpop.permute.xlu0 %1424 }
 0x637   : > { %v3042_v56 = vpop.eup %3041 }
 0x638   : > { %v1316_v57 = vsel %vm988_vm3, %v3042_v56, 0.0 }
 0x639   : > { %1317 = vadd.xlane.f32.xlu1 %v1316_v57 }
 0x63b   : > { %v3044_v58 = vpop.eup %3043 }
 0x63c   : > { %v1319_v59 = vsel %vm988_vm3, %v3044_v58, 0.0 }
 0x63d   : > { %1320 = vadd.xlane.f32.xlu1 %v1319_v59 }
 0x64e   : > { %1476 = vrot.lane.b32.xlu1 %v3529_v44, %s3245_s30 }
 0x652   : > { %1474 = vrot.lane.b32.xlu1 %v3529_v44, %s3246_s3 }
 0x6c2   : > { %v1318_v61 = vpop.xlane.xlu1 %1317 }
 0x6c3   : > { %3045 = vrcp.f32 %v1318_v61 }
 0x6c6   : > { %v1321_v62 = vpop.xlane.xlu1 %1320 }
 0x6c7   : > { %3047 = vrcp.f32 %v1321_v62 }
 0x6ca   : > { %v1477_v5 = vpop.permute.xlu1 %1476 }
 0x6cb   : > { %v1482_v7 = vsel %vm988_vm3, %v1477_v5, 0 }
 0x6ce   : > { %v1475_v9 = vpop.permute.xlu1 %1474 }
 0x6d0   : > { %v3046_v63 = vpop.eup %3045 }
 0x6d1   : > { %v1324_v0 = vmul.f32 %v3046_v63, %v3042_v56 }
 0x6d3   : > { %v1326_v1 = vpack.c.bf16 %v1324_v0, %v1324_v0 }
 0x6d4   : > { %v3048_v2 = vpop.eup %3047 }
 0x6d5   : > { %2822 = vmatmul.mubr.msk.bf16.vlgmr.msra.gmra.mxu1 %vm988_vm3, %v1326_v1  ;;  %v1325_v4 = vmul.f32 %v3048_v2, %v3044_v58 }
 0x6d6   : > { %2832 = vmatpush3.bf16.xpose.msra.mxu1 %v1432_v3  ;;  %2833 = vmatprep.mubr.msk.bf16.mxu1 %vm3239_vm1, %v3238_v31 }
 0x6d7   : > { %v1327_v6 = vpack.c.bf16 %v1325_v4, %v1325_v4  ;;  %2843 = vmatprep.subr.bf16.mxu1 %v3238_v31 }
 0x6d9   : > { %2828 = vmatmul.mubr.msk.bf16.vlgmr.msra.gmra.mxu0 %vm988_vm3, %v1327_v6 }
 0x6da   : > { %2838 = vmatpush3.bf16.xpose.msra.mxu0 %v1482_v7  ;;  %2839 = vmatprep.mubr.msk.bf16.mxu0 %vm3239_vm1, %v3238_v31 }
 0x6db   : > { %2849 = vmatprep.subr.bf16.mxu0 %v3238_v31 }
 0x6dd   : > { %2834 = vmatmul.mubr.msk.bf16.vlgmr.msra.gmra.mxu1 %vm988_vm3, %v1425_v8 }
 0x6de   : > { %2845 = vmatprep.mubr.msk.bf16.mxu1 %vm3239_vm1, %v3238_v31 }
 0x6e1   : > { %2840 = vmatmul.mubr.msk.bf16.vlgmr.msra.gmra.mxu0 %vm988_vm3, %v1475_v9 }
 0x6e2   : > { %2851 = vmatprep.mubr.msk.bf16.mxu0 %vm3239_vm1, %v3238_v31 }
 0x795   : > { %v3608_v10 = vpop.f32.mrf.mxu1 }
 0x797   : > { %v2823_v11 = vpop.f32.mrf.mxu1 }
 0x799   : > { %v1373_v12 = vpop.f32.mrf.mxu1  ;;  %v3610_v13 = vpop.f32.mrf.mxu0 }
 0x79a   : > { %v3008_v14 = vpack.i.bf16 %v3610_v13, %v3608_v10 }
 0x79b   : > { %v2824_v15 = vpop.f32.mrf.mxu1  ;;  %v2829_v16 = vpop.f32.mrf.mxu0 }
 0x79d   : > { %v1421_v17 = vpop.f32.mrf.mxu0  ;;  %v1468_v18 = vpop.f32.mrf.mxu1 }
 0x79e   : > { %v1524_v19 = vsel %vm988_vm3, %v1468_v18, -inf }
 0x79f   : > { %1525 = vmax.xlane.f32.xlu0 %v1524_v19  ;;  %v2830_v20 = vpop.f32.mrf.mxu0  ;;  %v2835_v21 = vpop.f32.mrf.mxu1 }
 0x7a1   : > { %v1471_v22 = vpop.f32.mrf.mxu1  ;;  %v1518_v24 = vpop.f32.mrf.mxu0 }
 0x7a2   : > { %v1527_v25 = vsel %vm988_vm3, %v1518_v24, -inf }
 0x7a3   : > { %v2836_v27 = vpop.f32.mrf.mxu1  ;;  %1528 = vmax.xlane.f32.xlu1 %v1527_v25  ;;  %v2841_v28 = vpop.f32.mrf.mxu0 }
 0x7a5   : > { %v1521_v29 = vpop.f32.mrf.mxu0 }
 0x7a7   : > { %v2842_v30 = vpop.f32.mrf.mxu0 }
 0x7b4   : > { %1548 = vrot.lane.b32.xlu1 %v3526_v40, %s3247_s22 }
 0x7b8   : > { %1646 = vrot.lane.b32.xlu1 %v3526_v40, %s3248_s6 }
 0x7bc   : > { %1696 = vrot.lane.b32.xlu1 %v3529_v44, %s3248_s6  ;;  %s3855_s6 = scalar_lea.vmem %s3807_s9, %s3438_s29 }
 0x7c0   : > { %1694 = vrot.lane.b32.xlu1 %v3529_v44, %s3249_s1 }
 0x828   : > { %v1526_v32 = vpop.xlane.xlu0 %1525 }
 0x829   : > { %v1530_v35 = vsub.f32 %v1468_v18, %v1526_v32 }
 0x82b   : > { %v1532_v36 = vmul.f32 1.442695, %v1530_v35 }
 0x82c   : > { %v1529_v37 = vpop.xlane.xlu1 %1528 }
 0x82d   : > { %3049 = vpow2.f32 %v1532_v36  ;;  %v1531_v38 = vsub.f32 %v1518_v24, %v1529_v37 }
 0x82f   : > { %v1534_v39 = vmul.f32 1.442695, %v1531_v38 }
 0x830   : > { %v1549_v41 = vpop.permute.xlu1 %1548 }
 0x831   : > { %3051 = vpow2.f32 %v1534_v39  ;;  %v1554_v42 = vsel %vm1112_vm4, %v1549_v41, 0 }
 0x832   : > { %2844 = vmatpush3.bf16.msra.mxu1 %v1554_v42 }
 0x833   : > { %2855 = vmatprep.subr.bf16.mxu1 %v3238_v31 }
 0x834   : > { %v1647_v53 = vpop.permute.xlu1 %1646 }
 0x835   : > { %v1652_v57 = vsel %vm988_vm3, %v1647_v53, 0 }
 0x838   : > { %v1697_v59 = vpop.permute.xlu1 %1696 }
 0x839   : > { %v1702_v61 = vsel %vm988_vm3, %v1697_v59, 0 }
 0x83a   : > { %v3050_v43 = vpop.eup %3049 }
 0x83b   : > { %v1536_v45 = vsel %vm988_vm3, %v3050_v43, 0.0 }
 0x83c   : > { %1537 = vadd.xlane.f32.xlu0 %v1536_v45  ;;  %v1695_v63 = vpop.permute.xlu1 %1694 }
 0x83e   : > { %v3052_v46 = vpop.eup %3051 }
 0x83f   : > { %v1539_v47 = vsel %vm988_vm3, %v3052_v46, 0.0 }
 0x840   : > { %1540 = vadd.xlane.f32.xlu0 %v1539_v47  ;;  %v3026_v47 = vld [vmem:[%s3453_s26] sm:$0xff]  }
 0x856   : > { %1596 = vrot.lane.b32.xlu0 %v3529_v44, %s3247_s22  ;;  %s3856_s22 = sld [smem:[#allocation25_spill]] (!%p2702_p10) }
 0x85a   : > { %1644 = vrot.lane.b32.xlu0 %v3526_v40, %s3249_s1 }
 0x8c5   : > { %v1538_v48 = vpop.xlane.xlu0 %1537 }
 0x8c6   : > { %3053 = vrcp.f32 %v1538_v48 }
 0x8c9   : > { %v1541_v49 = vpop.xlane.xlu0 %1540 }
 0x8ca   : > { %3055 = vrcp.f32 %v1541_v49 }
 0x8cd   : > { %v1597_v50 = vpop.permute.xlu0 %1596 }
 0x8ce   : > { %v1602_v51 = vsel %vm1112_vm4, %v1597_v50, 0 }
 0x8cf   : > { %2850 = vmatpush3.bf16.msra.mxu0 %v1602_v51 }
 0x8d0   : > { %2861 = vmatprep.subr.bf16.mxu0 %v3238_v31 }
 0x8d1   : > { %v1645_v62 = vpop.permute.xlu0 %1644 }
 0x8d3   : > { %v3054_v52 = vpop.eup %3053 }
 0x8d4   : > { %v1544_v54 = vmul.f32 %v3054_v52, %v3050_v43 }
 0x8d6   : > { %v1546_v55 = vpack.c.bf16 %v1544_v54, %v1544_v54 }
 0x8d7   : > { %v3056_v56 = vpop.eup %3055 }
 0x8d8   : > { %2846 = vmatmul.mubr.msk.bf16.vlgmr.msra.gmra.mxu1 %vm988_vm3, %v1546_v55  ;;  %v1545_v58 = vmul.f32 %v3056_v56, %v3052_v46  ;;  %v3025_v46 = vld [vmem:[%s3453_s26 + $0x8] sm:$0xff]  }
 0x8d9   : > { %2856 = vmatpush3.bf16.xpose.msra.mxu1 %v1652_v57  ;;  %2857 = vmatprep.mubr.msk.bf16.mxu1 %vm3239_vm1, %v3238_v31 }
 0x8da   : > { %v1547_v60 = vpack.c.bf16 %v1545_v58, %v1545_v58  ;;  %2867 = vmatprep.subr.bf16.mxu1 %v3238_v31 }
 0x8dc   : > { %2852 = vmatmul.mubr.msk.bf16.vlgmr.msra.gmra.mxu0 %vm988_vm3, %v1547_v60 }
 0x8dd   : > { %2862 = vmatpush3.bf16.xpose.msra.mxu0 %v1702_v61  ;;  %2863 = vmatprep.mubr.msk.bf16.mxu0 %vm3239_vm1, %v3238_v31 }
 0x8de   : > { %2873 = vmatprep.subr.bf16.mxu0 %v3238_v31 }
 0x8e0   : > { %2858 = vmatmul.mubr.msk.bf16.vlgmr.msra.gmra.mxu1 %vm988_vm3, %v1645_v62 }
 0x8e1   : > { %2869 = vmatprep.mubr.msk.bf16.mxu1 %vm3239_vm1, %v3238_v31 }
 0x8e4   : > { %2864 = vmatmul.mubr.msk.bf16.vlgmr.msra.gmra.mxu0 %vm988_vm3, %v1695_v63 }
 0x8e5   : > { %2875 = vmatprep.mubr.msk.bf16.mxu0 %vm3239_vm1, %v3238_v31 }
 0x998   : > { %v1590_v0 = vpop.f32.mrf.mxu1 }
 0x99a   : > { %v2847_v1 = vpop.f32.mrf.mxu1 }
 0x99c   : > { %v1593_v2 = vpop.f32.mrf.mxu1  ;;  %v1638_v3 = vpop.f32.mrf.mxu0 }
 0x99d   : > { %v3013_v21 = vpack.i.bf16 %v1638_v3, %v1590_v0 }
 0x99e   : > { %v2848_v4 = vpop.f32.mrf.mxu1  ;;  %v2853_v5 = vpop.f32.mrf.mxu0 }
 0x9a0   : > { %v1641_v6 = vpop.f32.mrf.mxu0  ;;  %v1688_v7 = vpop.f32.mrf.mxu1 }
 0x9a1   : > { %v1744_v8 = vsel %vm988_vm3, %v1688_v7, -inf }
 0x9a2   : > { %1745 = vmax.xlane.f32.xlu0 %v1744_v8  ;;  %v2854_v9 = vpop.f32.mrf.mxu0  ;;  %v2859_v11 = vpop.f32.mrf.mxu1 }
 0x9a4   : > { %v1691_v12 = vpop.f32.mrf.mxu1  ;;  %v1738_v15 = vpop.f32.mrf.mxu0 }
 0x9a5   : > { %v1747_v16 = vsel %vm988_vm3, %v1738_v15, -inf }
 0x9a6   : > { %v2860_v17 = vpop.f32.mrf.mxu1  ;;  %1748 = vmax.xlane.f32.xlu1 %v1747_v16  ;;  %v2865_v18 = vpop.f32.mrf.mxu0 }
 0x9a8   : > { %v1741_v19 = vpop.f32.mrf.mxu0 }
 0x9aa   : > { %v2866_v20 = vpop.f32.mrf.mxu0 }
 0x9b7   : > { %1768 = vrot.lane.b32.xlu1 %v3526_v40, %s3250_s28 }
 0x9bb   : > { %3009 = vrot.lane.b32.xlu1 %v3008_v14, %s3251_s24 }
 0x9bf   : > { %3014 = vrot.lane.b32.xlu1 %v3013_v21, %s3252_s25 }
 0xa2b   : > { %v1746_v22 = vpop.xlane.xlu0 %1745 }
 0xa2c   : > { %v1750_v24 = vsub.f32 %v1688_v7, %v1746_v22 }
 0xa2e   : > { %v1752_v25 = vmul.f32 1.442695, %v1750_v24 }
 0xa2f   : > { %v1749_v27 = vpop.xlane.xlu1 %1748 }
 0xa30   : > { %3057 = vpow2.f32 %v1752_v25  ;;  %v1751_v28 = vsub.f32 %v1738_v15, %v1749_v27 }
 0xa32   : > { %v1754_v29 = vmul.f32 1.442695, %v1751_v28 }
 0xa33   : > { %v1769_v30 = vpop.permute.xlu1 %1768 }
 0xa34   : > { %3059 = vpow2.f32 %v1754_v29  ;;  %v1774_v32 = vsel %vm1112_vm4, %v1769_v30, 0 }
 0xa35   : > { %2868 = vmatpush3.bf16.msra.mxu1 %v1774_v32 }
 0xa36   : > { %2879 = vmatprep.subr.bf16.mxu1 %v3238_v31 }
 0xa37   : > { %v3010_v57 = vpop.permute.xlu1 %3009 }
 0xa38   : > { %v3012_v59 = vunpack.i.h.bf16 %v3010_v57  ;;  %v3011_v60 = vunpack.i.l.bf16 %v3010_v57 }
 0xa3a   : > { %v1889_v0 = vsel %vm988_vm3, %v3576_v26, %v3012_v59  ;;  %v1888_v1 = vsel %vm988_vm3, %v3574_v23, %v3011_v60  ;;  %v2684_v26 = vld [vmem:[%s3853_s17] ss:$0 sm:$0xff]  ;;  %s3859_s17 = sld [smem:[#allocation18_spill]] (!%p2702_p10) }
 0xa3b   : > { %v3015_v58 = vpop.permute.xlu1 %3014 }
 0xa3c   : > { %v3017_v61 = vunpack.i.h.bf16 %v3015_v58  ;;  %v3016_v62 = vunpack.i.l.bf16 %v3015_v58 }
 0xa3d   : > { %v3058_v40 = vpop.eup %3057 }
 0xa3e   : > { %v1756_v10 = vsel %vm988_vm3, %v3058_v40, 0.0  ;;  %v1891_v4 = vsel %vm1890_vm5, %v1888_v1, %v3016_v62  ;;  %v1892_v5 = vsel %vm1890_vm5, %v1889_v0, %v3017_v61 }
 0xa3f   : > { %1757 = vadd.xlane.f32.xlu0 %v1756_v10 }
 0xa41   : > { %v3060_v13 = vpop.eup %3059 }
 0xa42   : > { %v1759_v14 = vsel %vm988_vm3, %v3060_v13, 0.0 }
 0xa43   : > { %1760 = vadd.xlane.f32.xlu0 %v1759_v14 }
 0xa59   : > { %1816 = vrot.lane.b32.xlu0 %v3529_v44, %s3250_s28 }
 0xac8   : > { %v1758_v35 = vpop.xlane.xlu0 %1757 }
 0xac9   : > { %3061 = vrcp.f32 %v1758_v35 }
 0xacc   : > { %v1761_v36 = vpop.xlane.xlu0 %1760 }
 0xacd   : > { %3063 = vrcp.f32 %v1761_v36 }
 0xad0   : > { %v1817_v37 = vpop.permute.xlu0 %1816 }
 0xad1   : > { %v1822_v38 = vsel %vm1112_vm4, %v1817_v37, 0 }
 0xad2   : > { %2874 = vmatpush3.bf16.msra.mxu0 %v1822_v38 }
 0xad3   : > { %2887 = vmatprep.subr.bf16.mxu0 %v3238_v31 }
 0xad6   : > { %v3062_v39 = vpop.eup %3061 }
 0xad7   : > { %v1764_v41 = vmul.f32 %v3062_v39, %v3058_v40  ;;  %v3028_v40 = vld [vmem:[%s3470_s23] sm:$0xff]  }
 0xad9   : > { %v1766_v42 = vpack.c.bf16 %v1764_v41, %v1764_v41 }
 0xada   : > { %v3064_v43 = vpop.eup %3063 }
 0xadb   : > { %2870 = vmatmul.mubr.msk.bf16.vlgmr.msra.gmra.mxu1 %vm988_vm3, %v1766_v42  ;;  %v1765_v45 = vmul.f32 %v3064_v43, %v3060_v13 }
 0xadc   : > { %2883 = vmatprep.mubr.msk.bf16.mxu1 %vm3239_vm1, %v3238_v31  ;;  %2880 = vmatpush3.bf16.msra.mxu1 %v3025_v46 }
 0xadd   : > { %v1767_v44 = vpack.c.bf16 %v1765_v45, %v1765_v45  ;;  %2881 = vmatprep.subr.bf16.mxu1 %v3238_v31 }
 0xadf   : > { %2876 = vmatmul.mubr.msk.bf16.vlgmr.msra.gmra.mxu0 %vm988_vm3, %v1767_v44  ;;  %v2689_v44 = vld [vmem:[%s3855_s6] ss:$0 sm:$0xff] }
 0xae0   : > { %2891 = vmatprep.mubr.msk.bf16.mxu0 %vm3239_vm1, %v3238_v31  ;;  %2882 = vmatpush3.bf16.msra.mxu1 %v3026_v47 }
 0xae1   : > { %2895 = vmatprep.subr.bf16.mxu1 %v3238_v31 }
 0xb9b   : > { %v1810_v48 = vpop.f32.mrf.mxu1 }
 0xb9d   : > { %v2871_v49 = vpop.f32.mrf.mxu1 }
 0xb9f   : > { %v1813_v50 = vpop.f32.mrf.mxu1  ;;  %v1858_v51 = vpop.f32.mrf.mxu0 }
 0xba0   : > { %v3018_v52 = vpack.i.bf16 %v1858_v51, %v1810_v48  ;;  %v3029_v50 = vld [vmem:[%s3480_s20 + $0x18] sm:$0xff]   ;;  %v3030_v51 = vld [vmem:[%s3480_s20 + $0x10] sm:$0xff]  }
 0xba1   : > { %v2872_v53 = vpop.f32.mrf.mxu1  ;;  %v2877_v54 = vpop.f32.mrf.mxu0 }
 0xba2   : > { %3019 = vrot.lane.b32.xlu0 %v3018_v52, %s3253_s21  ;;  %v3031_v52 = vld [vmem:[%s3480_s20 + $0x8] sm:$0xff]   ;;  %v3032_v53 = vld [vmem:[%s3480_s20] sm:$0xff]   ;;  %s3857_s21 = sld [smem:[#allocation24_spill]] (!%p2702_p10) }
 0xba3   : > { %v1861_v55 = vpop.f32.mrf.mxu0  ;;  %v2690_v54 = vld [vmem:[%s839_s4] ss:$0 sm:$0xff] }
 0xba5   : > { %v2878_v56 = vpop.f32.mrf.mxu0 }
 0xc14   : > { %v3020_v63 = vpop.permute.xlu0 %3019 }
 0xc15   : > { %v3022_v2 = vunpack.i.h.bf16 %v3020_v63  ;;  %v3021_v3 = vunpack.i.l.bf16 %v3020_v63 }
 0xc17   : > { %v1895_v6 = vsel %vm1893_vm6, %v1892_v5, %v3022_v2  ;;  %v1894_v7 = vsel %vm1893_vm6, %v1891_v4, %v3021_v3 }
 0xc18   : > { %v1896_v8 = vpack.c.bf16 %v1895_v6, %v1894_v7  ;;  %v2694_v7 = vld [vmem:[%s847_s0] ss:$0 sm:$0xff] }
 0xc1a   : > { %2884 = vmatmul.mubr.msk.bf16.vlgmr.msra.gmra.mxu1 %vm935_vm2, %v1896_v8 }
 0xc1b   : > { %2903 = vmatprep.mubr.msk.bf16.mxu1 %vm3239_vm1, %v3238_v31  ;;  %2896 = vmatpush3.bf16.msra.mxu1 %v3029_v50 }
 0xc1c   : > { %2897 = vmatprep.subr.bf16.mxu1 %v3238_v31 }
 0xc1f   : > { %2898 = vmatpush3.bf16.msra.mxu1 %v3030_v51 }
 0xc20   : > { %2899 = vmatprep.subr.bf16.mxu1 %v3238_v31 }
 0xc23   : > { %2900 = vmatpush3.bf16.msra.mxu1 %v3031_v52 }
 0xc24   : > { %2901 = vmatprep.subr.bf16.mxu1 %v3238_v31 }
 0xc27   : > { %2902 = vmatpush3.bf16.msra.mxu1 %v3032_v53 }
 0xcda   : > { %v1957_v9 = vpop.f32.mrf.mxu1 }
 0xcdb   : > { %v1958_v11 = vadd.f32 %v2684_v26, %v1957_v9 }
 0xcdc   : > { %v2885_v23 = vpop.f32.mrf.mxu1 }
 0xcdd   : > { %v1964_v12 = vadd.f32 %v1958_v11, %v3508_v33 }
 0xcde   : > { %v1960_v15 = vpop.f32.mrf.mxu1 }
 0xcdf   : > { %v1961_v16 = vadd.f32 %v2684_v26, %v1960_v15  ;;  %v1968_v17 = vsel %vm935_vm2, %v1964_v12, 0.0 }
 0xce0   : > { %1969 = vadd.xlane.f32.xlu1 %v1968_v17  ;;  %v2886_v18 = vpop.f32.mrf.mxu1 }
 0xce1   : > { %v1965_v19 = vadd.f32 %v1961_v16, %v3510_v34  ;;  %v3027_v34 = vld [vmem:[%s3470_s23 + $0x8] sm:$0xff]   ;;  %s3854_s23 = scalar_lea.vmem %s3806_s8, %s3438_s29 }
 0xce2   : > { %2888 = vmatpush3.bf16.msra.mxu0 %v3027_v34  ;;  %v2688_v41 = vld [vmem:[%s3854_s23] ss:$0 sm:$0xff] }
 0xce3   : > { %v1971_v20 = vsel %vm935_vm2, %v1965_v19, 0.0  ;;  %2889 = vmatprep.subr.bf16.mxu0 %v3238_v31 }
 0xce4   : > { %1972 = vadd.xlane.f32.xlu0 %v1971_v20 }
 0xce6   : > { %2890 = vmatpush3.bf16.msra.mxu0 %v3028_v40 }
 0xd69   : > { %v1970_v21 = vpop.xlane.xlu1 %1969 }
 0xd6a   : > { %v1975_v22 = vmul.f32 0.03125, %v1970_v21 }
 0xd6c   : > { %v1977_v24 = vsub.f32 %v1964_v12, %v1975_v22 }
 0xd6d   : > { %v1973_v25 = vpop.xlane.xlu0 %1972 }
 0xd6e   : > { %v1976_v27 = vmul.f32 0.03125, %v1973_v25  ;;  %v1979_v28 = vmul.f32 %v1977_v24, %v1977_v24 }
 0xd70   : > { %v1978_v33 = vsub.f32 %v1965_v19, %v1976_v27  ;;  %v1981_v29 = vsel %vm935_vm2, %v1979_v28, 0.0 }
 0xd71   : > { %1982 = vadd.xlane.f32.xlu0 %v1981_v29 }
 0xd72   : > { %v1980_v30 = vmul.f32 %v1978_v33, %v1978_v33 }
 0xd74   : > { %v1984_v32 = vsel %vm935_vm2, %v1980_v30, 0.0 }
 0xd75   : > { %1985 = vadd.xlane.f32.xlu1 %v1984_v32 }
 0xdfa   : > { %v1983_v10 = vpop.xlane.xlu0 %1982 }
 0xdfb   : > { %v1987_v13 = vmul.f32 0.03125, %v1983_v10 }
 0xdfd   : > { %v1989_v14 = vadd.f32 1e-12, %v1987_v13 }
 0xdfe   : > { %v1986_v35 = vpop.xlane.xlu1 %1985 }
 0xdff   : > { %3065 = vrsqrt.f32 %v1989_v14  ;;  %v1988_v36 = vmul.f32 0.03125, %v1986_v35  ;;  %v2700_v35 = vld [vmem:[%s850_s5] ss:$0 sm:$0xff] }
 0xe01   : > { %v1990_v37 = vadd.f32 1e-12, %v1988_v36 }
 0xe03   : > { %3067 = vrsqrt.f32 %v1990_v37  ;;  %v2701_v37 = vld [vmem:[%s853_s18] ss:$0 sm:$0xff]  ;;  %s3858_s18 = sld [smem:[#allocation26_spill]] (!%p2702_p10) }
 0xe0c   : > { %v3066_v38 = vpop.eup %3065 }
 0xe0d   : > { %v1993_v39 = vmul.f32 %v3066_v38, %v1977_v24 }
 0xe0f   : > { %v2001_v45 = vmul.f32 %v2688_v41, %v1993_v39 }
 0xe10   : > { %v3068_v42 = vpop.eup %3067 }
 0xe11   : > { %v1994_v43 = vmul.f32 %v3068_v42, %v1978_v33  ;;  %v2009_v47 = vadd.f32 %v2689_v44, %v2001_v45 }
 0xe13   : > { %v2002_v46 = vmul.f32 %v2688_v41, %v1994_v43 }
 0xe15   : > { %v2010_v48 = vadd.f32 %v2689_v44, %v2002_v46 }
 0xe17   : > { %v2011_v49 = vpack.c.bf16 %v2010_v48, %v2009_v47 }
 0xe19   : > { %2892 = vmatmul.mubr.msk.bf16.vlgmr.msra.gmra.mxu0 %vm935_vm2, %v2011_v49 }
 0xed9   : > { %v2072_v55 = vpop.f32.mrf.mxu0 }
 0xeda   : > { %v2073_v56 = vadd.f32 %v2690_v54, %v2072_v55 }
 0xedb   : > { %v2893_v57 = vpop.f32.mrf.mxu0 }
 0xedc   : > { %v2081_v58 = vmul.f32 0.70710677, %v2073_v56  ;;  %v2079_v1 = vmul.f32 0.5, %v2073_v56 }
 0xedd   : > { %v2075_v59 = vpop.f32.mrf.mxu0 }
 0xede   : > { %3069 = verf.f32 %v2081_v58  ;;  %v2076_v60 = vadd.f32 %v2690_v54, %v2075_v59 }
 0xedf   : > { %v2894_v61 = vpop.f32.mrf.mxu0 }
 0xee0   : > { %v2082_v62 = vmul.f32 0.70710677, %v2076_v60  ;;  %v2080_v2 = vmul.f32 0.5, %v2076_v60 }
 0xee2   : > { %3071 = verf.f32 %v2082_v62 }
 0xeeb   : > { %v3070_v63 = vpop.eup %3069 }
 0xeec   : > { %v2085_v31 = vadd.f32 1.0, %v3070_v63 }
 0xeee   : > { %v2087_v4 = vmul.f32 %v2085_v31, %v2079_v1 }
 0xeef   : > { %v3072_v0 = vpop.eup %3071 }
 0xef0   : > { %v2086_v3 = vadd.f32 1.0, %v3072_v0 }
 0xef2   : > { %v2088_v5 = vmul.f32 %v2086_v3, %v2080_v2 }
 0xef4   : > { %v2089_v6 = vpack.c.bf16 %v2088_v5, %v2087_v4 }
 0xef6   : > { %2904 = vmatmul.mubr.msk.bf16.vlgmr.msra.gmra.mxu1 %vm2129_vm7, %v2089_v6 }
 0xfb6   : > { %v2167_v8 = vpop.f32.mrf.mxu1 }
 0xfb7   : > { %v2168_v26 = vadd.f32 %v2694_v7, %v2167_v8 }
 0xfb8   : > { %v2905_v9 = vpop.f32.mrf.mxu1 }
 0xfb9   : > { %v2174_v11 = vadd.f32 %v2168_v26, %v2009_v47 }
 0xfba   : > { %v2170_v23 = vpop.f32.mrf.mxu1 }
 0xfbb   : > { %v2171_v12 = vadd.f32 %v2694_v7, %v2170_v23  ;;  %v2178_v15 = vsel %vm935_vm2, %v2174_v11, 0.0 }
 0xfbc   : > { %2179 = vadd.xlane.f32.xlu0 %v2178_v15  ;;  %v2906_v16 = vpop.f32.mrf.mxu1 }
 0xfbd   : > { %v2175_v17 = vadd.f32 %v2171_v12, %v2010_v48 }
 0xfbf   : > { %v2181_v18 = vsel %vm935_vm2, %v2175_v17, 0.0 }
 0xfc0   : > { %2182 = vadd.xlane.f32.xlu1 %v2181_v18 }
0x1045   : > { %v2180_v19 = vpop.xlane.xlu0 %2179 }
0x1046   : > { %v2184_v20 = vmul.f32 0.03125, %v2180_v19 }
0x1048   : > { %v2186_v21 = vsub.f32 %v2174_v11, %v2184_v20 }
0x1049   : > { %v2183_v22 = vpop.xlane.xlu1 %2182 }
0x104a   : > { %v2185_v24 = vmul.f32 0.03125, %v2183_v22  ;;  %v2188_v25 = vmul.f32 %v2186_v21, %v2186_v21 }
0x104c   : > { %v2187_v27 = vsub.f32 %v2175_v17, %v2185_v24  ;;  %v2190_v28 = vsel %vm935_vm2, %v2188_v25, 0.0 }
0x104d   : > { %2191 = vadd.xlane.f32.xlu0 %v2190_v28 }
0x104e   : > { %v2189_v33 = vmul.f32 %v2187_v27, %v2187_v27 }
0x1050   : > { %v2193_v29 = vsel %vm935_vm2, %v2189_v33, 0.0 }
0x1051   : > { %2194 = vadd.xlane.f32.xlu1 %v2193_v29 }
0x10d6   : > { %v2192_v30 = vpop.xlane.xlu0 %2191 }
0x10d7   : > { %v2196_v32 = vmul.f32 0.03125, %v2192_v30 }
0x10d9   : > { %v2198_v34 = vadd.f32 1e-12, %v2196_v32 }
0x10da   : > { %v2195_v40 = vpop.xlane.xlu1 %2194 }
0x10db   : > { %3073 = vrsqrt.f32 %v2198_v34  ;;  %v2197_v10 = vmul.f32 0.03125, %v2195_v40 }
0x10dd   : > { %v2199_v13 = vadd.f32 1e-12, %v2197_v10 }
0x10df   : > { %3075 = vrsqrt.f32 %v2199_v13 }
0x10e8   : > { %v3074_v14 = vpop.eup %3073 }
0x10e9   : > { %v2202_v36 = vmul.f32 %v3074_v14, %v2186_v21 }
0x10eb   : > { %v2210_v38 = vmul.f32 %v2700_v35, %v2202_v36 }
0x10ec   : > { %v3076_v39 = vpop.eup %3075 }
0x10ed   : > { %v2218_v41 = vadd.f32 %v2701_v37, %v2210_v38  ;;  %v2203_v42 = vmul.f32 %v3076_v39, %v2187_v27 }
0x10ef   : > { %2220 = vst.msk [vmem:[#allocation2] sm:$0xff] %vm935_vm2, %v2218_v41  ;;  %v2211_v43 = vmul.f32 %v2700_v35, %v2203_v42  ;;  %2225 = sbr.rel (%p2702_p10) target bundleno = 5415 (0x1527), region = 120 }
0x10f1   : > { %v2219_v45 = vadd.f32 %v2701_v37, %v2211_v43 }
0x10f3   : > { %2221 = vst.msk [vmem:[#allocation2 + $0x8] sm:$0xff] %vm935_vm2, %v2219_v45 }
0x10f4   : > { %v2229_v44 = vld [vmem:[%s3814_s16 + $0x18] sm:$0xff]  ;;  %v3254_v46 = vmov 0.0   ;;  %v2228_v47 = vld [vmem:[%s3814_s16 + $0x10] sm:$0xff]  ;;  %vm3255_vm8 = vmmov 0   ;;  %v2239_v48 = vrot.slane %v2219_v45, 7  ;;  %v2227_v49 = vld [vmem:[%s3814_s16 + $0x8] sm:$0xff] }
0x10f5   : > { %2907 = vmatprep.subr.mxu0 %v3254_v46  ;;  %2915 = vmatprep.mubr.msk.f32.mxu0 %vm3255_vm8, %v3254_v46  ;;  %vm2240_vm9 = vcmask 1041409   ;;  %v2226_v50 = vld [vmem:[%s3814_s16] sm:$0xff]  ;;  %v2318_v52 = vld [vmem:[%s3856_s22 + $0x18] sm:$0xff]  ;;  %v2317_v53 = vld [vmem:[%s3856_s22 + $0x10] sm:$0xff]  ;;  %vm2399_vm10 = vcmask 9216   ;;  %vm2419_vm11 = vcmask 1024  }
0x10f6   : > { %2908 = vmatpush3.msra.mxu0 %v2229_v44  ;;  %2918 = vmatprep.subr.mxu1 %v3254_v46  ;;  %v2241_v51 = vsel %vm2240_vm9, %v2239_v48, %v2218_v41  ;;  %v2316_v54 = vld [vmem:[%s3856_s22 + $0x8] sm:$0xff]  ;;  %v2315_v55 = vld [vmem:[%s3856_s22] sm:$0xff]  ;;  %vm2432_vm12 = vcmask 0  }
0x10f7   : > { %2909 = vmatprep.subr.mxu0 %v3254_v46  ;;  %2926 = vmatprep.mubr.msk.f32.mxu1 %vm3255_vm8, %v3254_v46  ;;  %v2703_v56 = vld [vmem:[%s3857_s21] ss:$0 sm:$0xff] }
0x10f8   : > { %2910 = vmatpush3.msra.mxu0 %v2228_v47  ;;  %2919 = vmatpush3.msra.mxu1 %v2318_v52  ;;  %v2705_v61 = vld [vmem:[%s3858_s18] ss:$0 sm:$0xff] }
0x10f9   : > { %2911 = vmatprep.subr.mxu0 %v3254_v46  ;;  %2920 = vmatprep.subr.mxu1 %v3254_v46  ;;  %v2412_v26 = vld [vmem:[%s3859_s17] sm:$0x3] }
0x10fa   : > { %2912 = vmatpush3.msra.mxu0 %v2227_v49  ;;  %2921 = vmatpush3.msra.mxu1 %v2317_v53 }
0x10fb   : > { %2913 = vmatprep.subr.mxu0 %v3254_v46  ;;  %2922 = vmatprep.subr.mxu1 %v3254_v46 }
0x10fc   : > { %2914 = vmatpush3.msra.mxu0 %v2226_v50  ;;  %2923 = vmatpush3.msra.mxu1 %v2316_v54 }
0x10fd   : > { %2916 = vmatmul.mubr.msk.f32.vlgmr.msra.gmra.mxu0 %vm935_vm2, %v2241_v51  ;;  %2924 = vmatprep.subr.mxu1 %v3254_v46 }
0x10fe   : > { %2925 = vmatpush3.msra.mxu1 %v2315_v55 }
0x11bd   : > { %v2310_v57 = vpop.f32.mrf.mxu0 }
0x11be   : > { %v2311_v58 = vadd.f32 %v2703_v56, %v2310_v57 }
0x11bf   : > { %v2917_v59 = vpop.f32.mrf.mxu0 }
0x11c0   : > { %3077 = vtanh.f32 %v2311_v58 }
0x11cd   : > { %v3078_v60 = vpop.eup %3077 }
0x11ce   : > { %2927 = vmatmul.mubr.msk.f32.vlgmr.msra.gmra.mxu1 %vm935_vm2, %v3078_v60 }
0x128e   : > { %v2395_v62 = vpop.f32.mrf.mxu1 }
0x128f   : > { %v2396_v63 = vadd.f32 %v2705_v61, %v2395_v62 }
0x1290   : > { %v2928_v31 = vpop.f32.mrf.mxu1 }
0x1291   : > { %v2401_v0 = vsel %vm2399_vm10, %v2396_v63, -inf  ;;  %2400 = vst.msk [vmem:[#allocation10] sm:$0x3] %vm2399_vm10, %v2396_v63 }
0x1292   : > { %2402 = vmax.xlane.f32.xlu0 %v2401_v0 }
0x131b   : > { %v2403_v1 = vpop.xlane.xlu0 %2402 }
0x131c   : > { %v2404_v2 = vsub.f32 %v2396_v63, %v2403_v1 }
0x131e   : > { %v2405_v3 = vmul.f32 1.442695, %v2404_v2 }
0x1320   : > { %3079 = vpow2.f32 %v2405_v3 }
0x132d   : > { %v3080_v4 = vpop.eup %3079 }
0x132e   : > { %v2407_v5 = vsel %vm2399_vm10, %v3080_v4, 0.0 }
0x132f   : > { %2408 = vadd.xlane.f32.xlu0 %v2407_v5 }
0x13b8   : > { %v2409_v6 = vpop.xlane.xlu0 %2408 }
0x13b9   : > { %3081 = vlog2.f32 %v2409_v6 }
0x13c6   : > { %v3082_v7 = vpop.eup %3081 }
0x13c7   : > { %v2411_v8 = vmul.f32 0.6931472, %v3082_v7 }
0x13c9   : > { %v2413_v9 = vsub.f32 %v2404_v2, %v2411_v8 }
0x13cb   : > { %v2414_v11 = vmul.f32 %v2413_v9, %v2412_v26 }
0x13cd   : > { %v2415_v23 = vsel %vm2399_vm10, %v2414_v11, 0.0 }
0x13ce   : > { %2416 = vadd.xlane.f32.xlu1 %v2415_v23 }
0x1457   : > { %v2417_v12 = vpop.xlane.xlu1 %2416 }
0x1458   : > { %v2418_v15 = vsub.f32 0.0, %v2417_v12 }
0x145a   : > { %v2420_v16 = vsel %vm2419_vm11, %v2418_v15, 0.0 }
0x145b   : > { %2421 = vadd.xlane.f32.xlu1 %v2420_v16 }
0x14e4   : > { %v2422_v17 = vpop.xlane.xlu1 %2421 }
0x14e5   : > { %v2423_v18 = vrot.slane %v2422_v17, 4 }
0x14e7   : > { %v2424_v19 = vadd.f32 %v2423_v18, %v2422_v17 }
0x14e9   : > { %v2425_v20 = vrot.slane %v2424_v19, 2 }
0x14eb   : > { %v2426_v21 = vadd.f32 %v2425_v20, %v2424_v19 }
0x14ed   : > { %v2427_v22 = vrot.slane %v2426_v21, 1 }
0x14ef   : > { %v2428_v24 = vadd.f32 %v2427_v22, %v2426_v21 }
0x14f1   : > { %2929 = vpush %v2428_v24 }
0x1522   : > { %s2930_s19 = spop %2929 }
0x1523   : > { %v2430_v25 = vstv %s2930_s19 }
0x1524   : > { %v2431_v27 = vmul.f32 0.5, %v2430_v25 }
0x1526   : > { %2433 = vst.msk [vmem:[#allocation9] sm:$0x1] %vm2432_vm12, %v2431_v27 }
0x1527 PF: > { %p2967_p2 = scmp.eq.s32.totalorder %s3374_s27, 1  ;;  %s3256_s30 = smov [#allocation9]  }
0x1528   : > { %s2441_s23 = sshll.u32 %s3256_s30, 4  ;;  %s3257_s3 = smov [#allocation10]   ;;  %s2442_s23 = int_to_ptr.vmem [resolvable:$true] %s2441_s23 }
0x1529   : > { %s2452_s6 = sshll.u32 %s3257_s3, 4  ;;  %s3161_s1 = scalar_lea.vmem %s2442_s23, 16  ;;  %s2453_s6 = int_to_ptr.vmem [resolvable:$true] %s2452_s6 }
0x152a   : > { %p3162_p3 = scmp.ne.s32.totalorder %s2442_s23, %s3161_s1  ;;  %s3167_s28 = scalar_lea.vmem %s2442_s23, 32 }
0x152b   : > { %p3168_p12 = scmp.lt.s32.totalorder %s2442_s23, %s2442_s23  ;;  %p3169_p13 = scmp.lt.s32.totalorder %s3167_s28, %s3161_s1 }
0x152c   : > { %p3163_p4 = pnand %p3162_p3, %p2967_p2 }
0x152d   : > { %p3170_p0 = por %p3169_p13, %p3168_p12 }
0x152e   : > { %p3164_p11 = pneg %p3163_p4 }
0x1530   : > { %p3171_p7 = pnand %p3170_p0, %p3164_p11 }
0x1532   : > { %3174 = shalt.err (!%p3171_p7)
}
0x1533   : > { %s3860_s0 = sld [smem:[#allocation27_spill]]  ;;  %s3185_s24 = scalar_lea.vmem %s2453_s6, 32 }
0x1534   : > { %p3186_p1 = scmp.ne.s32.totalorder %s2453_s6, %s3185_s24  ;;  %p3192_p9 = scmp.lt.s32.totalorder %s2453_s6, %s2453_s6 }
0x1535   : > { %p3193_p6 = scmp.lt.s32.totalorder %s3185_s24, %s3185_s24 }
0x1536   : > { %p3187_p5 = pnand %p3186_p1, %p2967_p2 }
0x1537   : > { %p3194_p10 = por %p3193_p6, %p3192_p9 }
0x1538   : > { %p3188_p8 = pneg %p3187_p5 }
0x1539   : > { %2944 = dma.vmem_to_hbm [thread:$0]  (%p2967_p2), %s2442_s23, 16, %s3860_s0, [#allocation5]  }
0x153a   : > { %p3195_p3 = pnand %p3194_p10, %p3188_p8 }
0x153c   : > { %3198 = shalt.err (!%p3195_p3)
}
0x153d   : > { %s3861_s5 = sld [smem:[#allocation28_spill]] }
0x1543   : > { %2946 = dma.vmem_to_hbm [thread:$0]  (%p2967_p2), %s2453_s6, 32, %s3861_s5, [#allocation11]  }
0x1544   : > { %3222 = dma.done.wait (%p2967_p2), [#allocation5], 16  }
0x1545   : > { %3224 = vsyncadd (%p2967_p2), [#allocation5], 4294967280 }
0x1546   : > { %3226 = dma.done.wait (%p2967_p2), [#allocation11], 32  }
0x1547   : > { %3228 = vsyncadd (%p2967_p2), [#allocation11], 4294967264 }
0x1548 PF: > { %s3862_s26 = sld [smem:[#allocation16_spill]] }
0x154e   : > { %s36_s2 = sadd.s32 1, %s3862_s26  }
0x154f   : > { %p33_p4 = scmp.ge.s32.totalorder %s36_s2, 4  }
0x1551   :  { %35 = sbr.rel (!%p33_p4) target bundleno = 17 (0x11), region = 189 }
0x1556   :  { %2469 = vsyncpa [#allocation4], 1 }
0x1557   :  { %2471 = vsyncpa [#allocation4 + $0x1], 1 }
0x1558   :  { %2472 = vsyncpa [#allocation7], 1 }
0x1559   :  { %2473 = vsyncpa [#allocation5], 1 }
0x155a   :  { %2475 = vsyncpa [#allocation5 + $0x1], 1 }
0x155b   :  { %2476 = vsyncpa [#allocation11], 1 }

</bundles_post_ra>
